<compile_context>
chip_gen: v6e
topology: v6e:2x2x1
jax: 0.10.0
libtpu: 0.0.40
codegen_flags: <defaults>
</compile_context>

<pallas_src>
import functools
import math

import jax
import jax.numpy as jnp
from jax.experimental import pallas as pl
from jax.experimental.pallas import tpu as pltpu


def _gelu_tanh(x):
    # TODO(synk): torch.nn.GELU() defaults to the exact erf form; the tanh
    # approximation (max abs err ~1e-3) is used for robust Mosaic lowering.
    c = 0.7978845608028654  # sqrt(2 / pi)
    return 0.5 * x * (1.0 + jnp.tanh(c * (x + 0.044715 * (x * x * x))))


def _mlp_mask_kernel(mask_smem, x_ref, w1_ref, b1_ref, w2_ref, b2_ref, o_ref, *,
                     groups_per_tile, rows_per_group, num_groups, elem_dtype):
    """One row tile (G whole (b,n) groups x M rows each) of
         masked_fill(Linear2(GELU(Linear1(x))), ~node_mask, 0).

    mask_smem: (B*N,) int32 node mask in SMEM (scalar-prefetched)
    x_ref    : (tr, H)  activations, streamed over the grid
    w1_ref   : (H, 4H)  bf16, VMEM-resident across the grid
    b1_ref   : (1, 4H)  f32
    w2_ref   : (4H, H)  bf16, VMEM-resident
    b2_ref   : (1, H)   f32
    o_ref    : (tr, H)  output
    """
    G, M = groups_per_tile, rows_per_group
    i = pl.program_id(0)

    # Per-group keep bits straight from SMEM scalars (no lane-width-1 VMEM
    # mask stream, no HBM mask array).
    grp_keep = []
    for g in range(G):                          # static unroll: G scalar loads
        gid = i * G + g
        valid = gid < num_groups                # ragged last tile -> phantom groups off
        bit = mask_smem[jnp.minimum(gid, num_groups - 1)] != 0
        grp_keep.append(jnp.logical_and(valid, bit))
    any_kept = grp_keep[0]
    for g in range(1, G):
        any_kept = jnp.logical_or(any_kept, grp_keep[g])

    @pl.when(any_kept)
    def _compute():
        wt = w1_ref.dtype
        x = x_ref[...].astype(wt)
        h = jnp.dot(x, w1_ref[...], preferred_element_type=jnp.float32)
        # bias + GELU in bf16 on v6e/v7x (EUP/VPU relief at small/mid H),
        # f32 on v5e (no bf16 VPU/EUP there).
        h = _gelu_tanh((h + b1_ref[...]).astype(elem_dtype)).astype(wt)
        y = jnp.dot(h, w2_ref[...], preferred_element_type=jnp.float32)
        y = (y + b2_ref[...]).astype(o_ref.dtype)
        for g in range(G):
            blk = y[g * M:(g + 1) * M, :]
            # select (not multiply): exact zeros, no NaN propagation from
            # masked-out rows (matches torch masked_fill semantics).
            o_ref[g * M:(g + 1) * M, :] = jnp.where(grp_keep[g], blk, 0.0).astype(o_ref.dtype)

    @pl.when(jnp.logical_not(any_kept))
    def _all_masked():                          # fully-masked tile: skip all compute
        o_ref[...] = jnp.zeros_like(o_ref)


def _pick_elementwise_dtype(compute_dtype):
    """bf16 bias/GELU only on chips with a bf16 VPU/EUP (v6e and newer)."""
    try:
        kind = jax.devices()[0].device_kind.lower()
    except Exception:
        return jnp.float32
    if any(v in kind for v in ("v2", "v3", "v4", "v5")):
        return jnp.float32
    return compute_dtype


def _vmem_limit_bytes():
    """~75% of physical VMEM: headroom on v7x (64 MiB), bigger tiles on v5e/v6e."""
    try:
        cap = int(pltpu.get_tpu_info().vmem_capacity_bytes)
        if cap > 0:
            return (cap * 3) // 4
    except Exception:
        pass
    return None


def protein_structure_condition(struct_condition, node_mask, params, *,
                                block_rows=None,
                                compute_dtype=jnp.bfloat16,
                                elementwise_dtype=None):
    """struct_condition: (B, N, M, H); node_mask: (B, N) -> output (B, N, M, H)."""
    w1, b1, w2, b2 = params
    B, N, M, H = struct_condition.shape
    H4 = w1.shape[1]
    assert w1.shape == (H, H4) and w2.shape == (H4, H)
    BN, R = B * N, B * N * M

    vmem_limit = _vmem_limit_bytes()
    if elementwise_dtype is None:
        elementwise_dtype = _pick_elementwise_dtype(compute_dtype)

    if block_rows is None:
        # ~1 MiB f32 activation tiles in the mem-bound small-H regime; tighter
        # cap for large H so x + (tr,4H) intermediates + resident weights stay
        # under the scoped VMEM limit (halved physical VMEM on v7x).
        block_rows = max(128, min(2048, (1 << 20) // max(4 * H, 1)))
        if H >= 512:
            small_vmem = vmem_limit is not None and vmem_limit <= (3 * (64 << 20)) // 4
            block_rows = min(block_rows, 256 if small_vmem else 512)

    # Row tiles cover whole (b, n) groups (M rows each) so the node mask can be
    # applied per-group from SMEM scalars; tr must be a multiple of 8 sublanes.
    d = 8 // math.gcd(M, 8)                       # smallest G with 8 | G*M
    target_g = max(1, min(block_rows // max(M, 1), BN, 128))
    G = max(d, (target_g // d) * d)
    tr = G * M
    num_tiles = pl.cdiv(BN, G)

    # No padding / broadcasting copies: reshape views only.
    x2 = struct_condition.reshape(R, H)
    mask_flat = (node_mask.reshape(BN) != 0).astype(jnp.int32)

    # bf16 MXU operands (f32 accumulation); biases stay f32.
    w1c = w1.astype(compute_dtype)
    w2c = w2.astype(compute_dtype)
    b1r = b1.reshape(1, H4).astype(jnp.float32)
    b2r = b2.reshape(1, H).astype(jnp.float32)

    kernel = functools.partial(
        _mlp_mask_kernel, groups_per_tile=G, rows_per_group=M,
        num_groups=BN, elem_dtype=elementwise_dtype)

    cp_kwargs = dict(dimension_semantics=("parallel",))   # 2-TC sharding on v7x
    if vmem_limit is not None:
        cp_kwargs["vmem_limit_bytes"] = vmem_limit
    compiler_params = pltpu.CompilerParams(**cp_kwargs)

    out_dtype = struct_condition.dtype

    def _run(resident_mode):
        spec_kwargs = {} if resident_mode is None else {"pipeline_mode": resident_mode}
        resident = lambda shape: pl.BlockSpec(shape, lambda i, msk: (0, 0), **spec_kwargs)
        return pl.pallas_call(
            kernel,
            out_shape=jax.ShapeDtypeStruct((R, H), out_dtype),
            grid_spec=pltpu.PrefetchScalarGridSpec(
                num_scalar_prefetch=1,
                grid=(num_tiles,),
                in_specs=[
                    pl.BlockSpec((tr, H), lambda i, msk: (i, 0)),   # streamed rows
                    resident((H, H4)),                              # w1 (resident)
                    resident((1, H4)),                              # b1
                    resident((H4, H)),                              # w2 (resident)
                    resident((1, H)),                               # b2
                ],
                out_specs=pl.BlockSpec((tr, H), lambda i, msk: (i, 0)),
            ),
            compiler_params=compiler_params,
        )(mask_flat, x2, w1c, b1r, w2c, b2r)

    try:
        # Single-buffer the grid-constant weights/biases (halves their VMEM).
        out = _run(pl.Buffered(1))
    except Exception:
        # Fallback for JAX versions without BlockSpec pipeline_mode support.
        out = _run(None)

    return out.reshape(B, N, M, H)


def _reference(struct_condition, node_mask, params):
    """Pure-JAX (f32) reference matching the PyTorch forward semantics."""
    w1, b1, w2, b2 = params
    B, N, M, H = struct_condition.shape
    x = struct_condition.reshape(B * N * M, H)
    h = _gelu_tanh(x @ w1 + b1.reshape(1, -1))
    y = (h @ w2 + b2.reshape(1, -1)).reshape(B, N, M, H)
    keep = node_mask.astype(bool)[:, :, None, None]
    return jnp.where(keep, y, 0.0)


def make_params(key, hidden_size):
    H = hidden_size
    k1, k2, k3, k4 = jax.random.split(key, 4)
    w1 = jax.random.normal(k1, (H, 4 * H), jnp.float32) / jnp.sqrt(H)      # (in, out)
    b1 = 0.1 * jax.random.normal(k2, (4 * H,), jnp.float32)
    w2 = jax.random.normal(k3, (4 * H, H), jnp.float32) / jnp.sqrt(4 * H)  # (in, out)
    b2 = 0.1 * jax.random.normal(k4, (H,), jnp.float32)
    return (w1, b1, w2, b2)


if __name__ == "__main__":
    B, N, M, H = 2, 8, 8, 32
    key = jax.random.PRNGKey(0)
    kx, km, kp = jax.random.split(key, 3)
    struct_condition = jax.random.normal(kx, (B, N, M, H), jnp.float32)
    node_mask = (jax.random.uniform(km, (B, N)) > 0.3).astype(jnp.float32)
    node_mask = node_mask.at[0, 0].set(0.0)   # masked group inside an active tile
    node_mask = node_mask.at[1, :].set(0.0)   # fully-masked tile -> exercises skip path
    params = make_params(kp, H)

    # block_rows=64 -> 8 (b,n) groups per tile -> a 2-step grid at this size.
    out = protein_structure_condition(struct_condition, node_mask, params,
                                      block_rows=64)
    out = jax.block_until_ready(out)

    ref = _reference(struct_condition, node_mask, params)
    assert out.shape == (B, N, M, H)
    # bf16 MXU operands (and possibly bf16 GELU) vs f32 reference -> loose tol.
    assert jnp.allclose(out, ref, atol=3e-2, rtol=3e-2), \
        f"max abs diff {float(jnp.max(jnp.abs(out - ref)))}"
    # Masked-out nodes must be exactly zero (masked_fill semantics).
    masked = node_mask[:, :, None, None] == 0
    assert bool(jnp.all(jnp.where(masked, out, 0.0) == 0.0))
    print("KERNEL_OK")
</pallas_src>

<mosaic_0001>
module attributes {stable_mosaic.version = 11 : i64} {
  func.func @_mlp_mask_kernel(%arg0: i32, %arg1: memref<16xi32, #tpu.memory_space<smem>>, %arg2: memref<64x32xf32, #tpu.memory_space<vmem>>, %arg3: memref<32x128xbf16, #tpu.memory_space<vmem>>, %arg4: memref<1x128xf32, #tpu.memory_space<vmem>>, %arg5: memref<128x32xbf16, #tpu.memory_space<vmem>>, %arg6: memref<1x32xf32, #tpu.memory_space<vmem>>, %arg7: memref<64x32xf32, #tpu.memory_space<vmem>>) attributes {dimension_semantics = [#tpu.dimension_semantics<parallel>], iteration_bounds = array<i64: 2>, scalar_prefetch = 1 : i64, scratch_operands = 0 : i64, tpu.core_type = #tpu.core_type<tc>, window_params = [{transform_indices = @transform_0, window_bounds = array<i64: 64, 32>}, {pipeline_mode = #tpu.pipeline_mode<synchronous>, transform_indices = @transform_1, window_bounds = array<i64: 32, 128>}, {pipeline_mode = #tpu.pipeline_mode<synchronous>, transform_indices = @transform_2, window_bounds = array<i64: 1, 128>}, {pipeline_mode = #tpu.pipeline_mode<synchronous>, transform_indices = @transform_3, window_bounds = array<i64: 128, 32>}, {pipeline_mode = #tpu.pipeline_mode<synchronous>, transform_indices = @transform_4, window_bounds = array<i64: 1, 32>}, {transform_indices = @transform_5, window_bounds = array<i64: 64, 32>}]} {
    %c8_i32 = arith.constant 8 : i32
    %0 = arith.muli %arg0, %c8_i32 : i32
    %c0_i32 = arith.constant 0 : i32
    %1 = arith.addi %0, %c0_i32 : i32
    %c16_i32 = arith.constant 16 : i32
    %2 = arith.cmpi slt, %1, %c16_i32 : i32
    %c15_i32 = arith.constant 15 : i32
    %3 = arith.minsi %1, %c15_i32 : i32
    %4 = arith.index_cast %3 : i32 to index
    %5 = memref.load %arg1[%4] : memref<16xi32, #tpu.memory_space<smem>>
    %c0_i32_0 = arith.constant 0 : i32
    %6 = arith.cmpi ne, %5, %c0_i32_0 : i32
    %7 = arith.andi %2, %6 : i1
    %c8_i32_1 = arith.constant 8 : i32
    %8 = arith.muli %arg0, %c8_i32_1 : i32
    %c1_i32 = arith.constant 1 : i32
    %9 = arith.addi %8, %c1_i32 : i32
    %c16_i32_2 = arith.constant 16 : i32
    %10 = arith.cmpi slt, %9, %c16_i32_2 : i32
    %c15_i32_3 = arith.constant 15 : i32
    %11 = arith.minsi %9, %c15_i32_3 : i32
    %12 = arith.index_cast %11 : i32 to index
    %13 = memref.load %arg1[%12] : memref<16xi32, #tpu.memory_space<smem>>
    %c0_i32_4 = arith.constant 0 : i32
    %14 = arith.cmpi ne, %13, %c0_i32_4 : i32
    %15 = arith.andi %10, %14 : i1
    %c8_i32_5 = arith.constant 8 : i32
    %16 = arith.muli %arg0, %c8_i32_5 : i32
    %c2_i32 = arith.constant 2 : i32
    %17 = arith.addi %16, %c2_i32 : i32
    %c16_i32_6 = arith.constant 16 : i32
    %18 = arith.cmpi slt, %17, %c16_i32_6 : i32
    %c15_i32_7 = arith.constant 15 : i32
    %19 = arith.minsi %17, %c15_i32_7 : i32
    %20 = arith.index_cast %19 : i32 to index
    %21 = memref.load %arg1[%20] : memref<16xi32, #tpu.memory_space<smem>>
    %c0_i32_8 = arith.constant 0 : i32
    %22 = arith.cmpi ne, %21, %c0_i32_8 : i32
    %23 = arith.andi %18, %22 : i1
    %c8_i32_9 = arith.constant 8 : i32
    %24 = arith.muli %arg0, %c8_i32_9 : i32
    %c3_i32 = arith.constant 3 : i32
    %25 = arith.addi %24, %c3_i32 : i32
    %c16_i32_10 = arith.constant 16 : i32
    %26 = arith.cmpi slt, %25, %c16_i32_10 : i32
    %c15_i32_11 = arith.constant 15 : i32
    %27 = arith.minsi %25, %c15_i32_11 : i32
    %28 = arith.index_cast %27 : i32 to index
    %29 = memref.load %arg1[%28] : memref<16xi32, #tpu.memory_space<smem>>
    %c0_i32_12 = arith.constant 0 : i32
    %30 = arith.cmpi ne, %29, %c0_i32_12 : i32
    %31 = arith.andi %26, %30 : i1
    %c8_i32_13 = arith.constant 8 : i32
    %32 = arith.muli %arg0, %c8_i32_13 : i32
    %c4_i32 = arith.constant 4 : i32
    %33 = arith.addi %32, %c4_i32 : i32
    %c16_i32_14 = arith.constant 16 : i32
    %34 = arith.cmpi slt, %33, %c16_i32_14 : i32
    %c15_i32_15 = arith.constant 15 : i32
    %35 = arith.minsi %33, %c15_i32_15 : i32
    %36 = arith.index_cast %35 : i32 to index
    %37 = memref.load %arg1[%36] : memref<16xi32, #tpu.memory_space<smem>>
    %c0_i32_16 = arith.constant 0 : i32
    %38 = arith.cmpi ne, %37, %c0_i32_16 : i32
    %39 = arith.andi %34, %38 : i1
    %c8_i32_17 = arith.constant 8 : i32
    %40 = arith.muli %arg0, %c8_i32_17 : i32
    %c5_i32 = arith.constant 5 : i32
    %41 = arith.addi %40, %c5_i32 : i32
    %c16_i32_18 = arith.constant 16 : i32
    %42 = arith.cmpi slt, %41, %c16_i32_18 : i32
    %c15_i32_19 = arith.constant 15 : i32
    %43 = arith.minsi %41, %c15_i32_19 : i32
    %44 = arith.index_cast %43 : i32 to index
    %45 = memref.load %arg1[%44] : memref<16xi32, #tpu.memory_space<smem>>
    %c0_i32_20 = arith.constant 0 : i32
    %46 = arith.cmpi ne, %45, %c0_i32_20 : i32
    %47 = arith.andi %42, %46 : i1
    %c8_i32_21 = arith.constant 8 : i32
    %48 = arith.muli %arg0, %c8_i32_21 : i32
    %c6_i32 = arith.constant 6 : i32
    %49 = arith.addi %48, %c6_i32 : i32
    %c16_i32_22 = arith.constant 16 : i32
    %50 = arith.cmpi slt, %49, %c16_i32_22 : i32
    %c15_i32_23 = arith.constant 15 : i32
    %51 = arith.minsi %49, %c15_i32_23 : i32
    %52 = arith.index_cast %51 : i32 to index
    %53 = memref.load %arg1[%52] : memref<16xi32, #tpu.memory_space<smem>>
    %c0_i32_24 = arith.constant 0 : i32
    %54 = arith.cmpi ne, %53, %c0_i32_24 : i32
    %55 = arith.andi %50, %54 : i1
    %c8_i32_25 = arith.constant 8 : i32
    %56 = arith.muli %arg0, %c8_i32_25 : i32
    %c7_i32 = arith.constant 7 : i32
    %57 = arith.addi %56, %c7_i32 : i32
    %c16_i32_26 = arith.constant 16 : i32
    %58 = arith.cmpi slt, %57, %c16_i32_26 : i32
    %c15_i32_27 = arith.constant 15 : i32
    %59 = arith.minsi %57, %c15_i32_27 : i32
    %60 = arith.index_cast %59 : i32 to index
    %61 = memref.load %arg1[%60] : memref<16xi32, #tpu.memory_space<smem>>
    %c0_i32_28 = arith.constant 0 : i32
    %62 = arith.cmpi ne, %61, %c0_i32_28 : i32
    %63 = arith.andi %58, %62 : i1
    %64 = arith.ori %7, %15 : i1
    %65 = arith.ori %64, %23 : i1
    %66 = arith.ori %65, %31 : i1
    %67 = arith.ori %66, %39 : i1
    %68 = arith.ori %67, %47 : i1
    %69 = arith.ori %68, %55 : i1
    %70 = arith.ori %69, %63 : i1
    %71 = arith.extui %70 : i1 to i32
    %c0_i32_29 = arith.constant 0 : i32
    %72 = arith.cmpi ne, %71, %c0_i32_29 : i32
    scf.if %72 {
      %c0 = arith.constant 0 : index
      %c0_31 = arith.constant 0 : index
      %76 = vector.load %arg2[%c0, %c0_31] : memref<64x32xf32, #tpu.memory_space<vmem>>, vector<64x32xf32>
      %77 = arith.truncf %76 : vector<64x32xf32> to vector<64x32xbf16>
      %c0_32 = arith.constant 0 : index
      %c0_33 = arith.constant 0 : index
      %78 = vector.load %arg3[%c0_32, %c0_33] : memref<32x128xbf16, #tpu.memory_space<vmem>>, vector<32x128xbf16>
      %cst = arith.constant dense<0.000000e+00> : vector<64x128xf32>
      %79 = tpu.matmul %77, %78, %cst {dimension_numbers = #tpu.dot_dimension_numbers<[1], [0], [0], [1], [0, 0, 1, 1], [], []>} : vector<64x32xbf16>, vector<32x128xbf16>, vector<64x128xf32> -> vector<64x128xf32>
      %c0_34 = arith.constant 0 : index
      %c0_35 = arith.constant 0 : index
      %80 = vector.load %arg4[%c0_34, %c0_35] : memref<1x128xf32, #tpu.memory_space<vmem>>, vector<1x128xf32>
      %81 = vector.broadcast %80 : vector<1x128xf32> to vector<64x128xf32>
      %82 = arith.addf %79, %81 : vector<64x128xf32>
      %83 = arith.truncf %82 : vector<64x128xf32> to vector<64x128xbf16>
      %cst_36 = arith.constant 5.000000e-01 : bf16
      %84 = vector.broadcast %cst_36 : bf16 to vector<64x128xbf16>
      %85 = arith.mulf %84, %83 : vector<64x128xbf16>
      %86 = arith.mulf %83, %83 : vector<64x128xbf16>
      %87 = arith.mulf %86, %83 : vector<64x128xbf16>
      %cst_37 = arith.constant 4.467770e-02 : bf16
      %88 = vector.broadcast %cst_37 : bf16 to vector<64x128xbf16>
      %89 = arith.mulf %88, %87 : vector<64x128xbf16>
      %90 = arith.addf %83, %89 : vector<64x128xbf16>
      %cst_38 = arith.constant 7.968750e-01 : bf16
      %91 = vector.broadcast %cst_38 : bf16 to vector<64x128xbf16>
      %92 = arith.mulf %91, %90 : vector<64x128xbf16>
      %93 = math.tanh %92 : vector<64x128xbf16>
      %cst_39 = arith.constant 1.000000e+00 : bf16
      %94 = vector.broadcast %cst_39 : bf16 to vector<64x128xbf16>
      %95 = arith.addf %94, %93 : vector<64x128xbf16>
      %96 = arith.mulf %85, %95 : vector<64x128xbf16>
      %c0_40 = arith.constant 0 : index
      %c0_41 = arith.constant 0 : index
      %97 = vector.load %arg5[%c0_40, %c0_41] : memref<128x32xbf16, #tpu.memory_space<vmem>>, vector<128x32xbf16>
      %cst_42 = arith.constant dense<0.000000e+00> : vector<64x32xf32>
      %98 = tpu.matmul %96, %97, %cst_42 {dimension_numbers = #tpu.dot_dimension_numbers<[1], [0], [0], [1], [0, 0, 1, 1], [], []>} : vector<64x128xbf16>, vector<128x32xbf16>, vector<64x32xf32> -> vector<64x32xf32>
      %c0_43 = arith.constant 0 : index
      %c0_44 = arith.constant 0 : index
      %99 = vector.load %arg6[%c0_43, %c0_44] : memref<1x32xf32, #tpu.memory_space<vmem>>, vector<1x32xf32>
      %100 = vector.broadcast %99 : vector<1x32xf32> to vector<64x32xf32>
      %101 = arith.addf %98, %100 : vector<64x32xf32>
      %102 = vector.extract_strided_slice %101 {offsets = [0, 0], sizes = [8, 32], strides = [1, 1]} : vector<64x32xf32> to vector<8x32xf32>
      %cst_45 = arith.constant 0.000000e+00 : f32
      %103 = vector.broadcast %cst_45 : f32 to vector<8x32xf32>
      %104 = arith.select %7, %102, %103 : vector<8x32xf32>
      %c0_46 = arith.constant 0 : index
      %c0_47 = arith.constant 0 : index
      %105 = vector.load %arg7[%c0_46, %c0_47] : memref<64x32xf32, #tpu.memory_space<vmem>>, vector<8x32xf32>
      tpu.vector_store %arg7[%c0_46, %c0_47], %104 {strides = array<i32>} : memref<64x32xf32, #tpu.memory_space<vmem>>, vector<8x32xf32>,
      %106 = vector.extract_strided_slice %101 {offsets = [8, 0], sizes = [8, 32], strides = [1, 1]} : vector<64x32xf32> to vector<8x32xf32>
      %cst_48 = arith.constant 0.000000e+00 : f32
      %107 = vector.broadcast %cst_48 : f32 to vector<8x32xf32>
      %108 = arith.select %15, %106, %107 : vector<8x32xf32>
      %c8 = arith.constant 8 : index
      %c0_49 = arith.constant 0 : index
      %109 = vector.load %arg7[%c8, %c0_49] : memref<64x32xf32, #tpu.memory_space<vmem>>, vector<8x32xf32>
      tpu.vector_store %arg7[%c8, %c0_49], %108 {strides = array<i32>} : memref<64x32xf32, #tpu.memory_space<vmem>>, vector<8x32xf32>,
      %110 = vector.extract_strided_slice %101 {offsets = [16, 0], sizes = [8, 32], strides = [1, 1]} : vector<64x32xf32> to vector<8x32xf32>
      %cst_50 = arith.constant 0.000000e+00 : f32
      %111 = vector.broadcast %cst_50 : f32 to vector<8x32xf32>
      %112 = arith.select %23, %110, %111 : vector<8x32xf32>
      %c16 = arith.constant 16 : index
      %c0_51 = arith.constant 0 : index
      %113 = vector.load %arg7[%c16, %c0_51] : memref<64x32xf32, #tpu.memory_space<vmem>>, vector<8x32xf32>
      tpu.vector_store %arg7[%c16, %c0_51], %112 {strides = array<i32>} : memref<64x32xf32, #tpu.memory_space<vmem>>, vector<8x32xf32>,
      %114 = vector.extract_strided_slice %101 {offsets = [24, 0], sizes = [8, 32], strides = [1, 1]} : vector<64x32xf32> to vector<8x32xf32>
      %cst_52 = arith.constant 0.000000e+00 : f32
      %115 = vector.broadcast %cst_52 : f32 to vector<8x32xf32>
      %116 = arith.select %31, %114, %115 : vector<8x32xf32>
      %c24 = arith.constant 24 : index
      %c0_53 = arith.constant 0 : index
      %117 = vector.load %arg7[%c24, %c0_53] : memref<64x32xf32, #tpu.memory_space<vmem>>, vector<8x32xf32>
      tpu.vector_store %arg7[%c24, %c0_53], %116 {strides = array<i32>} : memref<64x32xf32, #tpu.memory_space<vmem>>, vector<8x32xf32>,
      %118 = vector.extract_strided_slice %101 {offsets = [32, 0], sizes = [8, 32], strides = [1, 1]} : vector<64x32xf32> to vector<8x32xf32>
      %cst_54 = arith.constant 0.000000e+00 : f32
      %119 = vector.broadcast %cst_54 : f32 to vector<8x32xf32>
      %120 = arith.select %39, %118, %119 : vector<8x32xf32>
      %c32 = arith.constant 32 : index
      %c0_55 = arith.constant 0 : index
      %121 = vector.load %arg7[%c32, %c0_55] : memref<64x32xf32, #tpu.memory_space<vmem>>, vector<8x32xf32>
      tpu.vector_store %arg7[%c32, %c0_55], %120 {strides = array<i32>} : memref<64x32xf32, #tpu.memory_space<vmem>>, vector<8x32xf32>,
      %122 = vector.extract_strided_slice %101 {offsets = [40, 0], sizes = [8, 32], strides = [1, 1]} : vector<64x32xf32> to vector<8x32xf32>
      %cst_56 = arith.constant 0.000000e+00 : f32
      %123 = vector.broadcast %cst_56 : f32 to vector<8x32xf32>
      %124 = arith.select %47, %122, %123 : vector<8x32xf32>
      %c40 = arith.constant 40 : index
      %c0_57 = arith.constant 0 : index
      %125 = vector.load %arg7[%c40, %c0_57] : memref<64x32xf32, #tpu.memory_space<vmem>>, vector<8x32xf32>
      tpu.vector_store %arg7[%c40, %c0_57], %124 {strides = array<i32>} : memref<64x32xf32, #tpu.memory_space<vmem>>, vector<8x32xf32>,
      %126 = vector.extract_strided_slice %101 {offsets = [48, 0], sizes = [8, 32], strides = [1, 1]} : vector<64x32xf32> to vector<8x32xf32>
      %cst_58 = arith.constant 0.000000e+00 : f32
      %127 = vector.broadcast %cst_58 : f32 to vector<8x32xf32>
      %128 = arith.select %55, %126, %127 : vector<8x32xf32>
      %c48 = arith.constant 48 : index
      %c0_59 = arith.constant 0 : index
      %129 = vector.load %arg7[%c48, %c0_59] : memref<64x32xf32, #tpu.memory_space<vmem>>, vector<8x32xf32>
      tpu.vector_store %arg7[%c48, %c0_59], %128 {strides = array<i32>} : memref<64x32xf32, #tpu.memory_space<vmem>>, vector<8x32xf32>,
      %130 = vector.extract_strided_slice %101 {offsets = [56, 0], sizes = [8, 32], strides = [1, 1]} : vector<64x32xf32> to vector<8x32xf32>
      %cst_60 = arith.constant 0.000000e+00 : f32
      %131 = vector.broadcast %cst_60 : f32 to vector<8x32xf32>
      %132 = arith.select %63, %130, %131 : vector<8x32xf32>
      %c56 = arith.constant 56 : index
      %c0_61 = arith.constant 0 : index
      %133 = vector.load %arg7[%c56, %c0_61] : memref<64x32xf32, #tpu.memory_space<vmem>>, vector<8x32xf32>
      tpu.vector_store %arg7[%c56, %c0_61], %132 {strides = array<i32>} : memref<64x32xf32, #tpu.memory_space<vmem>>, vector<8x32xf32>,
    } else {
    }
    %true = arith.constant true
    %73 = arith.xori %70, %true : i1
    %74 = arith.extui %73 : i1 to i32
    %c0_i32_30 = arith.constant 0 : i32
    %75 = arith.cmpi ne, %74, %c0_i32_30 : i32
    scf.if %75 {
      %cst = arith.constant 0.000000e+00 : f32
      %76 = vector.broadcast %cst : f32 to vector<64x32xf32>
      %c0 = arith.constant 0 : index
      %c0_31 = arith.constant 0 : index
      %77 = vector.load %arg7[%c0, %c0_31] : memref<64x32xf32, #tpu.memory_space<vmem>>, vector<64x32xf32>
      tpu.vector_store %arg7[%c0, %c0_31], %76 {strides = array<i32>} : memref<64x32xf32, #tpu.memory_space<vmem>>, vector<64x32xf32>,
    } else {
    }
    return
  }
  func.func @transform_0(%arg0: i32, %arg1: memref<16xi32, #tpu.memory_space<smem>>) -> (i32, i32) {
    %c0_i32 = arith.constant 0 : i32
    %c0_i32_0 = arith.constant 0 : i32
    return %arg0, %c0_i32 : i32, i32
  }
  func.func @transform_1(%arg0: i32, %arg1: memref<16xi32, #tpu.memory_space<smem>>) -> (i32, i32) {
    %c0_i32 = arith.constant 0 : i32
    %c0_i32_0 = arith.constant 0 : i32
    %c0_i32_1 = arith.constant 0 : i32
    return %c0_i32, %c0_i32_0 : i32, i32
  }
  func.func @transform_2(%arg0: i32, %arg1: memref<16xi32, #tpu.memory_space<smem>>) -> (i32, i32) {
    %c0_i32 = arith.constant 0 : i32
    %c0_i32_0 = arith.constant 0 : i32
    %c0_i32_1 = arith.constant 0 : i32
    return %c0_i32, %c0_i32_0 : i32, i32
  }
  func.func @transform_3(%arg0: i32, %arg1: memref<16xi32, #tpu.memory_space<smem>>) -> (i32, i32) {
    %c0_i32 = arith.constant 0 : i32
    %c0_i32_0 = arith.constant 0 : i32
    %c0_i32_1 = arith.constant 0 : i32
    return %c0_i32, %c0_i32_0 : i32, i32
  }
  func.func @transform_4(%arg0: i32, %arg1: memref<16xi32, #tpu.memory_space<smem>>) -> (i32, i32) {
    %c0_i32 = arith.constant 0 : i32
    %c0_i32_0 = arith.constant 0 : i32
    %c0_i32_1 = arith.constant 0 : i32
    return %c0_i32, %c0_i32_0 : i32, i32
  }
  func.func @transform_5(%arg0: i32, %arg1: memref<16xi32, #tpu.memory_space<smem>>) -> (i32, i32) {
    %c0_i32 = arith.constant 0 : i32
    %c0_i32_0 = arith.constant 0 : i32
    return %arg0, %c0_i32 : i32, i32
  }
}

module attributes {stable_mosaic.version = 11 : i64} {
  func.func @_mlp_mask_kernel(%arg0: i32, %arg1: memref<16xi32, #tpu.memory_space<smem>>, %arg2: memref<64x32xf32, #tpu.memory_space<vmem>>, %arg3: memref<32x128xbf16, #tpu.memory_space<vmem>>, %arg4: memref<1x128xf32, #tpu.memory_space<vmem>>, %arg5: memref<128x32xbf16, #tpu.memory_space<vmem>>, %arg6: memref<1x32xf32, #tpu.memory_space<vmem>>, %arg7: memref<64x32xf32, #tpu.memory_space<vmem>>) attributes {dimension_semantics = [#tpu.dimension_semantics<parallel>], iteration_bounds = array<i64: 2>, scalar_prefetch = 1 : i64, scratch_operands = 0 : i64, tpu.core_type = #tpu.core_type<tc>, window_params = [{transform_indices = @transform_0, window_bounds = array<i64: 64, 32>}, {pipeline_mode = #tpu.pipeline_mode<synchronous>, transform_indices = @transform_1, window_bounds = array<i64: 32, 128>}, {pipeline_mode = #tpu.pipeline_mode<synchronous>, transform_indices = @transform_2, window_bounds = array<i64: 1, 128>}, {pipeline_mode = #tpu.pipeline_mode<synchronous>, transform_indices = @transform_3, window_bounds = array<i64: 128, 32>}, {pipeline_mode = #tpu.pipeline_mode<synchronous>, transform_indices = @transform_4, window_bounds = array<i64: 1, 32>}, {transform_indices = @transform_5, window_bounds = array<i64: 64, 32>}]} {
    %c8_i32 = arith.constant 8 : i32
    %0 = arith.muli %arg0, %c8_i32 : i32
    %c0_i32 = arith.constant 0 : i32
    %1 = arith.addi %0, %c0_i32 : i32
    %c16_i32 = arith.constant 16 : i32
    %2 = arith.cmpi slt, %1, %c16_i32 : i32
    %c15_i32 = arith.constant 15 : i32
    %3 = arith.minsi %1, %c15_i32 : i32
    %4 = arith.index_cast %3 : i32 to index
    %5 = memref.load %arg1[%4] : memref<16xi32, #tpu.memory_space<smem>>
    %c0_i32_0 = arith.constant 0 : i32
    %6 = arith.cmpi ne, %5, %c0_i32_0 : i32
    %7 = arith.andi %2, %6 : i1
    %c8_i32_1 = arith.constant 8 : i32
    %8 = arith.muli %arg0, %c8_i32_1 : i32
    %c1_i32 = arith.constant 1 : i32
    %9 = arith.addi %8, %c1_i32 : i32
    %c16_i32_2 = arith.constant 16 : i32
    %10 = arith.cmpi slt, %9, %c16_i32_2 : i32
    %c15_i32_3 = arith.constant 15 : i32
    %11 = arith.minsi %9, %c15_i32_3 : i32
    %12 = arith.index_cast %11 : i32 to index
    %13 = memref.load %arg1[%12] : memref<16xi32, #tpu.memory_space<smem>>
    %c0_i32_4 = arith.constant 0 : i32
    %14 = arith.cmpi ne, %13, %c0_i32_4 : i32
    %15 = arith.andi %10, %14 : i1
    %c8_i32_5 = arith.constant 8 : i32
    %16 = arith.muli %arg0, %c8_i32_5 : i32
    %c2_i32 = arith.constant 2 : i32
    %17 = arith.addi %16, %c2_i32 : i32
    %c16_i32_6 = arith.constant 16 : i32
    %18 = arith.cmpi slt, %17, %c16_i32_6 : i32
    %c15_i32_7 = arith.constant 15 : i32
    %19 = arith.minsi %17, %c15_i32_7 : i32
    %20 = arith.index_cast %19 : i32 to index
    %21 = memref.load %arg1[%20] : memref<16xi32, #tpu.memory_space<smem>>
    %c0_i32_8 = arith.constant 0 : i32
    %22 = arith.cmpi ne, %21, %c0_i32_8 : i32
    %23 = arith.andi %18, %22 : i1
    %c8_i32_9 = arith.constant 8 : i32
    %24 = arith.muli %arg0, %c8_i32_9 : i32
    %c3_i32 = arith.constant 3 : i32
    %25 = arith.addi %24, %c3_i32 : i32
    %c16_i32_10 = arith.constant 16 : i32
    %26 = arith.cmpi slt, %25, %c16_i32_10 : i32
    %c15_i32_11 = arith.constant 15 : i32
    %27 = arith.minsi %25, %c15_i32_11 : i32
    %28 = arith.index_cast %27 : i32 to index
    %29 = memref.load %arg1[%28] : memref<16xi32, #tpu.memory_space<smem>>
    %c0_i32_12 = arith.constant 0 : i32
    %30 = arith.cmpi ne, %29, %c0_i32_12 : i32
    %31 = arith.andi %26, %30 : i1
    %c8_i32_13 = arith.constant 8 : i32
    %32 = arith.muli %arg0, %c8_i32_13 : i32
    %c4_i32 = arith.constant 4 : i32
    %33 = arith.addi %32, %c4_i32 : i32
    %c16_i32_14 = arith.constant 16 : i32
    %34 = arith.cmpi slt, %33, %c16_i32_14 : i32
    %c15_i32_15 = arith.constant 15 : i32
    %35 = arith.minsi %33, %c15_i32_15 : i32
    %36 = arith.index_cast %35 : i32 to index
    %37 = memref.load %arg1[%36] : memref<16xi32, #tpu.memory_space<smem>>
    %c0_i32_16 = arith.constant 0 : i32
    %38 = arith.cmpi ne, %37, %c0_i32_16 : i32
    %39 = arith.andi %34, %38 : i1
    %c8_i32_17 = arith.constant 8 : i32
    %40 = arith.muli %arg0, %c8_i32_17 : i32
    %c5_i32 = arith.constant 5 : i32
    %41 = arith.addi %40, %c5_i32 : i32
    %c16_i32_18 = arith.constant 16 : i32
    %42 = arith.cmpi slt, %41, %c16_i32_18 : i32
    %c15_i32_19 = arith.constant 15 : i32
    %43 = arith.minsi %41, %c15_i32_19 : i32
    %44 = arith.index_cast %43 : i32 to index
    %45 = memref.load %arg1[%44] : memref<16xi32, #tpu.memory_space<smem>>
    %c0_i32_20 = arith.constant 0 : i32
    %46 = arith.cmpi ne, %45, %c0_i32_20 : i32
    %47 = arith.andi %42, %46 : i1
    %c8_i32_21 = arith.constant 8 : i32
    %48 = arith.muli %arg0, %c8_i32_21 : i32
    %c6_i32 = arith.constant 6 : i32
    %49 = arith.addi %48, %c6_i32 : i32
    %c16_i32_22 = arith.constant 16 : i32
    %50 = arith.cmpi slt, %49, %c16_i32_22 : i32
    %c15_i32_23 = arith.constant 15 : i32
    %51 = arith.minsi %49, %c15_i32_23 : i32
    %52 = arith.index_cast %51 : i32 to index
    %53 = memref.load %arg1[%52] : memref<16xi32, #tpu.memory_space<smem>>
    %c0_i32_24 = arith.constant 0 : i32
    %54 = arith.cmpi ne, %53, %c0_i32_24 : i32
    %55 = arith.andi %50, %54 : i1
    %c8_i32_25 = arith.constant 8 : i32
    %56 = arith.muli %arg0, %c8_i32_25 : i32
    %c7_i32 = arith.constant 7 : i32
    %57 = arith.addi %56, %c7_i32 : i32
    %c16_i32_26 = arith.constant 16 : i32
    %58 = arith.cmpi slt, %57, %c16_i32_26 : i32
    %c15_i32_27 = arith.constant 15 : i32
    %59 = arith.minsi %57, %c15_i32_27 : i32
    %60 = arith.index_cast %59 : i32 to index
    %61 = memref.load %arg1[%60] : memref<16xi32, #tpu.memory_space<smem>>
    %c0_i32_28 = arith.constant 0 : i32
    %62 = arith.cmpi ne, %61, %c0_i32_28 : i32
    %63 = arith.andi %58, %62 : i1
    %64 = arith.ori %7, %15 : i1
    %65 = arith.ori %64, %23 : i1
    %66 = arith.ori %65, %31 : i1
    %67 = arith.ori %66, %39 : i1
    %68 = arith.ori %67, %47 : i1
    %69 = arith.ori %68, %55 : i1
    %70 = arith.ori %69, %63 : i1
    %71 = arith.extui %70 : i1 to i32
    %c0_i32_29 = arith.constant 0 : i32
    %72 = arith.cmpi ne, %71, %c0_i32_29 : i32
    scf.if %72 {
      %c0 = arith.constant 0 : index
      %c0_31 = arith.constant 0 : index
      %76 = vector.load %arg2[%c0, %c0_31] : memref<64x32xf32, #tpu.memory_space<vmem>>, vector<64x32xf32>
      %77 = arith.truncf %76 : vector<64x32xf32> to vector<64x32xbf16>
      %c0_32 = arith.constant 0 : index
      %c0_33 = arith.constant 0 : index
      %78 = vector.load %arg3[%c0_32, %c0_33] : memref<32x128xbf16, #tpu.memory_space<vmem>>, vector<32x128xbf16>
      %cst = arith.constant dense<0.000000e+00> : vector<64x128xf32>
      %79 = tpu.matmul %77, %78, %cst {dimension_numbers = #tpu.dot_dimension_numbers<[1], [0], [0], [1], [0, 0, 1, 1], [], []>} : vector<64x32xbf16>, vector<32x128xbf16>, vector<64x128xf32> -> vector<64x128xf32>
      %c0_34 = arith.constant 0 : index
      %c0_35 = arith.constant 0 : index
      %80 = vector.load %arg4[%c0_34, %c0_35] : memref<1x128xf32, #tpu.memory_space<vmem>>, vector<1x128xf32>
      %81 = vector.broadcast %80 : vector<1x128xf32> to vector<64x128xf32>
      %82 = arith.addf %79, %81 : vector<64x128xf32>
      %83 = arith.truncf %82 : vector<64x128xf32> to vector<64x128xbf16>
      %cst_36 = arith.constant 5.000000e-01 : bf16
      %84 = vector.broadcast %cst_36 : bf16 to vector<64x128xbf16>
      %85 = arith.mulf %84, %83 : vector<64x128xbf16>
      %86 = arith.mulf %83, %83 : vector<64x128xbf16>
      %87 = arith.mulf %86, %83 : vector<64x128xbf16>
      %cst_37 = arith.constant 4.467770e-02 : bf16
      %88 = vector.broadcast %cst_37 : bf16 to vector<64x128xbf16>
      %89 = arith.mulf %88, %87 : vector<64x128xbf16>
      %90 = arith.addf %83, %89 : vector<64x128xbf16>
      %cst_38 = arith.constant 7.968750e-01 : bf16
      %91 = vector.broadcast %cst_38 : bf16 to vector<64x128xbf16>
      %92 = arith.mulf %91, %90 : vector<64x128xbf16>
      %93 = math.tanh %92 : vector<64x128xbf16>
      %cst_39 = arith.constant 1.000000e+00 : bf16
      %94 = vector.broadcast %cst_39 : bf16 to vector<64x128xbf16>
      %95 = arith.addf %94, %93 : vector<64x128xbf16>
      %96 = arith.mulf %85, %95 : vector<64x128xbf16>
      %c0_40 = arith.constant 0 : index
      %c0_41 = arith.constant 0 : index
      %97 = vector.load %arg5[%c0_40, %c0_41] : memref<128x32xbf16, #tpu.memory_space<vmem>>, vector<128x32xbf16>
      %cst_42 = arith.constant dense<0.000000e+00> : vector<64x32xf32>
      %98 = tpu.matmul %96, %97, %cst_42 {dimension_numbers = #tpu.dot_dimension_numbers<[1], [0], [0], [1], [0, 0, 1, 1], [], []>} : vector<64x128xbf16>, vector<128x32xbf16>, vector<64x32xf32> -> vector<64x32xf32>
      %c0_43 = arith.constant 0 : index
      %c0_44 = arith.constant 0 : index
      %99 = vector.load %arg6[%c0_43, %c0_44] : memref<1x32xf32, #tpu.memory_space<vmem>>, vector<1x32xf32>
      %100 = vector.broadcast %99 : vector<1x32xf32> to vector<64x32xf32>
      %101 = arith.addf %98, %100 : vector<64x32xf32>
      %102 = vector.extract_strided_slice %101 {offsets = [0, 0], sizes = [8, 32], strides = [1, 1]} : vector<64x32xf32> to vector<8x32xf32>
      %cst_45 = arith.constant 0.000000e+00 : f32
      %103 = vector.broadcast %cst_45 : f32 to vector<8x32xf32>
      %104 = arith.select %7, %102, %103 : vector<8x32xf32>
      %c0_46 = arith.constant 0 : index
      %c0_47 = arith.constant 0 : index
      %105 = vector.load %arg7[%c0_46, %c0_47] : memref<64x32xf32, #tpu.memory_space<vmem>>, vector<8x32xf32>
      tpu.vector_store %arg7[%c0_46, %c0_47], %104 {strides = array<i32>} : memref<64x32xf32, #tpu.memory_space<vmem>>, vector<8x32xf32>,
      %106 = vector.extract_strided_slice %101 {offsets = [8, 0], sizes = [8, 32], strides = [1, 1]} : vector<64x32xf32> to vector<8x32xf32>
      %cst_48 = arith.constant 0.000000e+00 : f32
      %107 = vector.broadcast %cst_48 : f32 to vector<8x32xf32>
      %108 = arith.select %15, %106, %107 : vector<8x32xf32>
      %c8 = arith.constant 8 : index
      %c0_49 = arith.constant 0 : index
      %109 = vector.load %arg7[%c8, %c0_49] : memref<64x32xf32, #tpu.memory_space<vmem>>, vector<8x32xf32>
      tpu.vector_store %arg7[%c8, %c0_49], %108 {strides = array<i32>} : memref<64x32xf32, #tpu.memory_space<vmem>>, vector<8x32xf32>,
      %110 = vector.extract_strided_slice %101 {offsets = [16, 0], sizes = [8, 32], strides = [1, 1]} : vector<64x32xf32> to vector<8x32xf32>
      %cst_50 = arith.constant 0.000000e+00 : f32
      %111 = vector.broadcast %cst_50 : f32 to vector<8x32xf32>
      %112 = arith.select %23, %110, %111 : vector<8x32xf32>
      %c16 = arith.constant 16 : index
      %c0_51 = arith.constant 0 : index
      %113 = vector.load %arg7[%c16, %c0_51] : memref<64x32xf32, #tpu.memory_space<vmem>>, vector<8x32xf32>
      tpu.vector_store %arg7[%c16, %c0_51], %112 {strides = array<i32>} : memref<64x32xf32, #tpu.memory_space<vmem>>, vector<8x32xf32>,
      %114 = vector.extract_strided_slice %101 {offsets = [24, 0], sizes = [8, 32], strides = [1, 1]} : vector<64x32xf32> to vector<8x32xf32>
      %cst_52 = arith.constant 0.000000e+00 : f32
      %115 = vector.broadcast %cst_52 : f32 to vector<8x32xf32>
      %116 = arith.select %31, %114, %115 : vector<8x32xf32>
      %c24 = arith.constant 24 : index
      %c0_53 = arith.constant 0 : index
      %117 = vector.load %arg7[%c24, %c0_53] : memref<64x32xf32, #tpu.memory_space<vmem>>, vector<8x32xf32>
      tpu.vector_store %arg7[%c24, %c0_53], %116 {strides = array<i32>} : memref<64x32xf32, #tpu.memory_space<vmem>>, vector<8x32xf32>,
      %118 = vector.extract_strided_slice %101 {offsets = [32, 0], sizes = [8, 32], strides = [1, 1]} : vector<64x32xf32> to vector<8x32xf32>
      %cst_54 = arith.constant 0.000000e+00 : f32
      %119 = vector.broadcast %cst_54 : f32 to vector<8x32xf32>
      %120 = arith.select %39, %118, %119 : vector<8x32xf32>
      %c32 = arith.constant 32 : index
      %c0_55 = arith.constant 0 : index
      %121 = vector.load %arg7[%c32, %c0_55] : memref<64x32xf32, #tpu.memory_space<vmem>>, vector<8x32xf32>
      tpu.vector_store %arg7[%c32, %c0_55], %120 {strides = array<i32>} : memref<64x32xf32, #tpu.memory_space<vmem>>, vector<8x32xf32>,
      %122 = vector.extract_strided_slice %101 {offsets = [40, 0], sizes = [8, 32], strides = [1, 1]} : vector<64x32xf32> to vector<8x32xf32>
      %cst_56 = arith.constant 0.000000e+00 : f32
      %123 = vector.broadcast %cst_56 : f32 to vector<8x32xf32>
      %124 = arith.select %47, %122, %123 : vector<8x32xf32>
      %c40 = arith.constant 40 : index
      %c0_57 = arith.constant 0 : index
      %125 = vector.load %arg7[%c40, %c0_57] : memref<64x32xf32, #tpu.memory_space<vmem>>, vector<8x32xf32>
      tpu.vector_store %arg7[%c40, %c0_57], %124 {strides = array<i32>} : memref<64x32xf32, #tpu.memory_space<vmem>>, vector<8x32xf32>,
      %126 = vector.extract_strided_slice %101 {offsets = [48, 0], sizes = [8, 32], strides = [1, 1]} : vector<64x32xf32> to vector<8x32xf32>
      %cst_58 = arith.constant 0.000000e+00 : f32
      %127 = vector.broadcast %cst_58 : f32 to vector<8x32xf32>
      %128 = arith.select %55, %126, %127 : vector<8x32xf32>
      %c48 = arith.constant 48 : index
      %c0_59 = arith.constant 0 : index
      %129 = vector.load %arg7[%c48, %c0_59] : memref<64x32xf32, #tpu.memory_space<vmem>>, vector<8x32xf32>
      tpu.vector_store %arg7[%c48, %c0_59], %128 {strides = array<i32>} : memref<64x32xf32, #tpu.memory_space<vmem>>, vector<8x32xf32>,
      %130 = vector.extract_strided_slice %101 {offsets = [56, 0], sizes = [8, 32], strides = [1, 1]} : vector<64x32xf32> to vector<8x32xf32>
      %cst_60 = arith.constant 0.000000e+00 : f32
      %131 = vector.broadcast %cst_60 : f32 to vector<8x32xf32>
      %132 = arith.select %63, %130, %131 : vector<8x32xf32>
      %c56 = arith.constant 56 : index
      %c0_61 = arith.constant 0 : index
      %133 = vector.load %arg7[%c56, %c0_61] : memref<64x32xf32, #tpu.memory_space<vmem>>, vector<8x32xf32>
      tpu.vector_store %arg7[%c56, %c0_61], %132 {strides = array<i32>} : memref<64x32xf32, #tpu.memory_space<vmem>>, vector<8x32xf32>,
    } else {
    }
    %true = arith.constant true
    %73 = arith.xori %70, %true : i1
    %74 = arith.extui %73 : i1 to i32
    %c0_i32_30 = arith.constant 0 : i32
    %75 = arith.cmpi ne, %74, %c0_i32_30 : i32
    scf.if %75 {
      %cst = arith.constant 0.000000e+00 : f32
      %76 = vector.broadcast %cst : f32 to vector<64x32xf32>
      %c0 = arith.constant 0 : index
      %c0_31 = arith.constant 0 : index
      %77 = vector.load %arg7[%c0, %c0_31] : memref<64x32xf32, #tpu.memory_space<vmem>>, vector<64x32xf32>
      tpu.vector_store %arg7[%c0, %c0_31], %76 {strides = array<i32>} : memref<64x32xf32, #tpu.memory_space<vmem>>, vector<64x32xf32>,
    } else {
    }
    return
  }
  func.func @transform_0(%arg0: i32, %arg1: memref<16xi32, #tpu.memory_space<smem>>) -> (i32, i32) {
    %c0_i32 = arith.constant 0 : i32
    %c0_i32_0 = arith.constant 0 : i32
    return %arg0, %c0_i32 : i32, i32
  }
  func.func @transform_1(%arg0: i32, %arg1: memref<16xi32, #tpu.memory_space<smem>>) -> (i32, i32) {
    %c0_i32 = arith.constant 0 : i32
    %c0_i32_0 = arith.constant 0 : i32
    %c0_i32_1 = arith.constant 0 : i32
    return %c0_i32, %c0_i32_0 : i32, i32
  }
  func.func @transform_2(%arg0: i32, %arg1: memref<16xi32, #tpu.memory_space<smem>>) -> (i32, i32) {
    %c0_i32 = arith.constant 0 : i32
    %c0_i32_0 = arith.constant 0 : i32
    %c0_i32_1 = arith.constant 0 : i32
    return %c0_i32, %c0_i32_0 : i32, i32
  }
  func.func @transform_3(%arg0: i32, %arg1: memref<16xi32, #tpu.memory_space<smem>>) -> (i32, i32) {
    %c0_i32 = arith.constant 0 : i32
    %c0_i32_0 = arith.constant 0 : i32
    %c0_i32_1 = arith.constant 0 : i32
    return %c0_i32, %c0_i32_0 : i32, i32
  }
  func.func @transform_4(%arg0: i32, %arg1: memref<16xi32, #tpu.memory_space<smem>>) -> (i32, i32) {
    %c0_i32 = arith.constant 0 : i32
    %c0_i32_0 = arith.constant 0 : i32
    %c0_i32_1 = arith.constant 0 : i32
    return %c0_i32, %c0_i32_0 : i32, i32
  }
  func.func @transform_5(%arg0: i32, %arg1: memref<16xi32, #tpu.memory_space<smem>>) -> (i32, i32) {
    %c0_i32 = arith.constant 0 : i32
    %c0_i32_0 = arith.constant 0 : i32
    return %arg0, %c0_i32 : i32, i32
  }
}

</mosaic_0001>

<bundles_post_ra>
// kernel: tpu_custom_call.1
= control target key start
LH: loop header
LB: loop body
LE: loop exit
PB: predicated region body
PF: predicated region fallthrough
CT: control target
= control target key end

     0   :  { %s1094_s0 = inlined_call_operand.vmem [shape: s32[16], index: 0, kind: input, shape index: {}]   ;;  %s1095_s1 = inlined_call_operand.vmem [shape: f32[128,32], index: 1, kind: input, shape index: {}]   ;;  %s1096_s2 = inlined_call_operand.vmem [shape: bf16[32,128], index: 2, kind: input, shape index: {}]   ;;  %s1097_s3 = inlined_call_operand.vmem [shape: f32[1,128], index: 3, kind: input, shape index: {}]   ;;  %s1098_s4 = inlined_call_operand.vmem [shape: bf16[128,32], index: 4, kind: input, shape index: {}]   ;;  %s1099_s5 = inlined_call_operand.vmem [shape: f32[1,32], index: 5, kind: input, shape index: {}]   ;;  %s1100_s6 = inlined_call_operand.vmem [shape: f32[128,32], index: 6, kind: output, shape index: {}]  }
   0x1   :  { %s11_s23 = sshll.u32 %s1094_s0, 4  ;;  %s12_s23 = int_to_ptr.vmem [resolvable:$true] %s11_s23 }
   0x2   :  { %s829_s24 = scalar_lea.vmem %s12_s23, 16  ;;  %p834_p1 = scmp.lt.s32.totalorder %s12_s23, %s12_s23 }
   0x3   :  { %p830_p0 = scmp.ne.s32.totalorder %s12_s23, %s829_s24  ;;  %p835_p2 = scmp.lt.s32.totalorder %s829_s24, %s829_s24 }
   0x5   :  { %p836_p3 = por %p835_p2, %p834_p1 }
   0x7   :  { %p837_p4 = pnand %p836_p3, %p830_p0 }
   0x9   :  { %840 = shalt.err (!%p837_p4)  }
   0xa   :  { %s851_s25 = smov [#allocation3]  }
   0xb   :  { %14 = dma.vmem_to_smem %s12_s23, 16, %s851_s25, [#allocation2] }
   0xc   :  { %845 = dma.done.wait [#allocation2], 16 }
   0xd   :  { %846 = vsyncadd [#allocation2], 4294967280 }
   0xe   :  { %16 = sfence }
   0xf   :  { %s891_s26 = smov 0  }
  0x10 LB: > { %s711_s0 = sadd.s32 4294967295, %s849_s26   ;;  %p715_p5 = scmp.ge.s32.totalorder %s849_s26, 1  ;;  %s849_s26 = sphi %s891_s26, %s22_s26  }
  0x11   : > { %p195_p6 = scmp.lt.s32.totalorder %s849_s26, 3 }
  0x13   : > { %p196_p7 = pnand %p715_p5, %p195_p6 }
  0x14   : > { %s899_s27 = sshll.u32 (!%p196_p7), %s711_s0, 3 }
  0x15   : > { %199 = sbr.rel (%p196_p7) target bundleno = 535 (0x217), region = 40  ;;  %p224_p8 = scmp.lt.s32.totalorder (!%p196_p7), %s899_s27, 15 }
  0x16   : > { %p241_p9 = scmp.lt.s32.totalorder (!%p196_p7), %s899_s27, 16  ;;  %s248_s28 = sadd.s32 (!%p196_p7), 1, %s899_s27 }
  0x17   : > { %p250_p10 = scmp.lt.s32.totalorder (!%p196_p7), %s248_s28, 15  ;;  %s256_s30 = sadd.s32 (!%p196_p7), 2, %s899_s27 }
  0x18   : > { %p249_p11 = scmp.lt.s32.totalorder (!%p196_p7), %s248_s28, 16  ;;  %p258_p12 = scmp.lt.s32.totalorder (!%p196_p7), %s256_s30, 15 }
  0x19   : > { %s264_s17 = sadd.s32 (!%p196_p7), 3, %s899_s27  ;;  %p257_p0 = scmp.lt.s32.totalorder (!%p196_p7), %s256_s30, 16 }
  0x1a   : > { %s225_s29 = scalar_select %p224_p8, %s899_s27, 15 }
  0x1b   : > { %s251_s15 = scalar_select %p250_p10, %s248_s28, 15 }
  0x1c   : > { %s717_s7 = sshll.u32 %s225_s29, 3  ;;  %s244_s8 = sld [smem:[#allocation3 + %s225_s29]] }
  0x1d   : > { %s909_s11 = scalar_lea.vmem %s1095_s1, %s717_s7  ;;  %s914_s14 = scalar_lea.vmem %s1100_s6, %s717_s7 }
  0x1e   : > { %s252_s16 = sld [smem:[#allocation3 + %s251_s15]]  ;;  %p266_p1 = scmp.lt.s32.totalorder %s264_s17, 15 }
  0x1f   : > { %s259_s18 = scalar_select %p258_p12, %s256_s30, 15 }
  0x20   : > { %s924_s21 = sadd.s32 4, %s899_s27  ;;  %p265_p4 = scmp.lt.s32.totalorder %s264_s17, 16 }
  0x21   : > { %s260_s19 = sld [smem:[#allocation3 + %s259_s18]]  ;;  %p274_p7 = scmp.lt.s32.totalorder %s924_s21, 15 }
  0x22   : > { %p245_p13 = scmp.ne.s32.totalorder %s244_s8, 0  ;;  %s280_s25 = sadd.s32 5, %s899_s27 }
  0x23   : > { %s267_s22 = scalar_select %p266_p1, %s264_s17, 15 }
  0x24   : > { %p919_p2 = pnand %p245_p13, %p241_p9  ;;  %p253_p3 = scmp.ne.s32.totalorder %s252_s16, 0 }
  0x25   : > { %s268_s23 = sld [smem:[#allocation3 + %s267_s22]]  ;;  %p273_p10 = scmp.lt.s32.totalorder %s924_s21, 16 }
  0x26   : > { %s1107_s20 = scalar_select %p919_p2, 1, 0 }
  0x27   : > { %p929_p6 = pnand %p253_p3, %p249_p11  ;;  %p261_p8 = scmp.ne.s32.totalorder %s260_s19, 0 }
  0x28   : > { %p282_p13 = scmp.lt.s32.totalorder %s280_s25, 15  ;;  %s288_s7 = sadd.s32 6, %s899_s27 }
  0x29   : > { %s1108_s24 = scalar_select %p929_p6, 1, 0 }
  0x2a   : > { %p939_p12 = pnand %p261_p8, %p257_p0  ;;  %p290_p8 = scmp.lt.s32.totalorder %s288_s7, 15 }
  0x2b   : > { %s275_s28 = scalar_select %p274_p7, %s924_s21, 15 }
  0x2c   : > { %s1109_s0 = scalar_select %p939_p12, 1, 0 }
  0x2d   : > { %p269_p11 = scmp.ne.s32.totalorder %s268_s23, 0  ;;  %s276_s29 = sld [smem:[#allocation3 + %s275_s28]] }
  0x2e   : > { %s283_s30 = scalar_select %p282_p13, %s280_s25, 15 }
  0x2f   : > { %p948_p9 = pnand %p269_p11, %p265_p4  ;;  %s296_s10 = sadd.s32 7, %s899_s27 }
  0x30   : > { %s284_s9 = sld [smem:[#allocation3 + %s283_s30]]  ;;  %p298_p5 = scmp.lt.s32.totalorder %s296_s10, 15 }
  0x31   : > { %s1110_s8 = scalar_select %p948_p9, 1, 0 }
  0x32   : > { %s291_s12 = scalar_select %p290_p8, %s288_s7, 15 }
  0x33   : > { %p277_p1 = scmp.ne.s32.totalorder %s276_s29, 0  ;;  %p1112_p4 = pneg %p919_p2 }
  0x34   : > { %s292_s13 = sld [smem:[#allocation3 + %s291_s12]]  ;;  %p1113_p13 = pneg %p929_p6 }
  0x35   : > { %p957_p3 = pnand %p277_p1, %p273_p10  ;;  %p1114_p7 = pneg %p939_p12 }
  0x36   : > { %p304_p11 = por %p1113_p13, %p1112_p4  ;;  %p285_p8 = scmp.ne.s32.totalorder %s284_s9, 0 }
  0x37   : > { %s1111_s15 = scalar_select %p957_p3, 1, 0 }
  0x38   : > { %s299_s16 = scalar_select %p298_p5, %s296_s10, 15 }
  0x39   : > { %p279_p0 = pneg %p957_p3  ;;  %p305_p9 = por %p304_p11, %p1114_p7 }
  0x3a   : > { %s300_s27 = sld [smem:[#allocation3 + %s299_s16]]  ;;  %p1115_p1 = scmp.lt.s32.totalorder %s280_s25, 16 }
  0x3b   : > { %p293_p2 = scmp.ne.s32.totalorder %s292_s13, 0  ;;  %p1117_p6 = scmp.ne.s32.totalorder %s1110_s8, 0 }
  0x3c   : > { %p973_p10 = pnand %p285_p8, %p1115_p1  ;;  %p297_p3 = scmp.lt.s32.totalorder %s296_s10, 16 }
  0x3d   : > { %p1118_p4 = pneg %p1117_p6  ;;  %p1119_p12 = scmp.lt.s32.totalorder %s288_s7, 16 }
  0x3e   : > { %s1116_s17 = scalar_select %p973_p10, 1, 0 }
  0x3f   : > { %p306_p13 = por %p305_p9, %p1118_p4  ;;  %p287_p5 = pneg %p973_p10 }
  0x40   : > { %p983_p7 = pnand %p293_p2, %p1119_p12  ;;  %p301_p1 = scmp.ne.s32.totalorder %s300_s27, 0 }
  0x41   : > { %p307_p11 = por %p306_p13, %p279_p0 }
  0x42   : > { %p295_p8 = pneg %p983_p7  ;;  %p989_p4 = pnand %p301_p1, %p297_p3 }
  0x43   : > { %p308_p6 = por %p307_p11, %p287_p5 }
  0x44   : > { %p303_p10 = pneg %p989_p4 }
  0x45   : > { %p309_p9 = por %p308_p6, %p295_p8 }
  0x47   : > { %p995_p2 = por %p309_p9, %p303_p10 }
  0x48   : > { %v811_v0 = vld [vmem:[%s1096_s2 + $0x8] sm:$0xff] (%p995_p2)   ;;  %v812_v1 = vld [vmem:[%s1096_s2] sm:$0xff] (%p995_p2)   ;;  %vm349_vm0 = vcmask (%p995_p2), 261120   ;;  %v316_v5 = vld [vmem:[%s909_s11 + $0x10] sm:$0xff] (%p995_p2)  ;;  %p1123_p12 = scmp.ne.s32.totalorder (%p995_p2), %s1109_s0, 0  ;;  %p1124_p3 = scmp.ne.s32.totalorder (%p995_p2), %s1107_s20, 0 }
  0x49   : > { %313 = sbr.rel (!%p995_p2) target bundleno = 525 (0x20d), region = 44  ;;  %765 = vmatprep.subr.bf16.mxu0 (%p995_p2), %v811_v0  ;;  %v314_v2 = vld [vmem:[%s909_s11] sm:$0xff] (%p995_p2)  ;;  %v315_v3 = vld [vmem:[%s909_s11 + $0x8] sm:$0xff] (%p995_p2)  ;;  %v317_v6 = vld [vmem:[%s909_s11 + $0x18] sm:$0xff] (%p995_p2)  ;;  %p1125_p0 = scmp.ne.s32.totalorder (%p995_p2), %s1110_s8, 0 }
  0x4a   : > { %766 = vmatpush3.bf16.msra.mxu0 (%p995_p2), %v811_v0  ;;  %v322_v4 = vpack.c.bf16 (%p995_p2), %v315_v3, %v314_v2  ;;  %v318_v7 = vld [vmem:[%s909_s11 + $0x20] sm:$0xff] (%p995_p2)  ;;  %v319_v8 = vld [vmem:[%s909_s11 + $0x28] sm:$0xff] (%p995_p2)  ;;  %v323_v9 = vpack.c.bf16 (%p995_p2), %v317_v6, %v316_v5  ;;  %v320_v11 = vld [vmem:[%s909_s11 + $0x30] sm:$0xff] (%p995_p2)  ;;  %p1126_p10 = scmp.ne.s32.totalorder (%p995_p2), %s1108_s24, 0  ;;  %p1127_p13 = scmp.ne.s32.totalorder (%p995_p2), %s1111_s15, 0 }
  0x4b   : > { %767 = vmatprep.subr.bf16.mxu0 (%p995_p2), %v812_v1  ;;  %v324_v10 = vpack.c.bf16 (%p995_p2), %v319_v8, %v318_v7  ;;  %v321_v12 = vld [vmem:[%s909_s11 + $0x38] sm:$0xff] (%p995_p2)  ;;  %v814_v15 = vld [vmem:[%s1098_s4 + $0x30] sm:$0xff] (%p995_p2)   ;;  %v815_v16 = vld [vmem:[%s1098_s4 + $0x28] sm:$0xff] (%p995_p2)   ;;  %p1128_p5 = scmp.ne.s32.totalorder (%p995_p2), %s1116_s17, 0 }
  0x4c   : > { %769 = vmatprep.mubr.msk.bf16.mxu0 (%p995_p2), %vm349_vm0, %v322_v4  ;;  %v325_v13 = vpack.c.bf16 (%p995_p2), %v321_v12, %v320_v11  ;;  %v813_v14 = vld [vmem:[%s1098_s4 + $0x38] sm:$0xff] (%p995_p2)   ;;  %v816_v17 = vld [vmem:[%s1098_s4 + $0x20] sm:$0xff] (%p995_p2)   ;;  %v818_v19 = vld [vmem:[%s1098_s4 + $0x10] sm:$0xff] (%p995_p2)  }
  0x4d   : > { %777 = vmatprep.subr.bf16.mxu1 (%p995_p2), %v813_v14  ;;  %v817_v18 = vld [vmem:[%s1098_s4 + $0x18] sm:$0xff] (%p995_p2)   ;;  %v819_v20 = vld [vmem:[%s1098_s4 + $0x8] sm:$0xff] (%p995_p2)   ;;  %v820_v21 = vld [vmem:[%s1098_s4] sm:$0xff] (%p995_p2)  }
  0x4e   : > { %768 = vmatpush3.bf16.msra.mxu0 %v812_v1  ;;  %778 = vmatpush3.bf16.msra.mxu1 %v813_v14  ;;  %v721_v23 = vld [vmem:[%s1097_s3] ss:$0 sm:$0xff]  ;;  %s739_s10 = scalar_select %p1123_p12, 0, 1 }
  0x4f   : > { %779 = vmatprep.subr.bf16.mxu1 %v814_v15  ;;  %s737_s12 = scalar_select %p1124_p3, 0, 1 }
  0x50   : > { %s740_s11 = scalar_select %p1125_p0, 0, 1 }
  0x51   : > { %770 = vmatmul.mubr.msk.bf16.vlgmr.msra.gmra.mxu0 %vm349_vm0, %v323_v9  ;;  %s738_s27 = scalar_select %p1126_p10, 0, 1 }
  0x52   : > { %773 = vmatprep.mubr.msk.bf16.mxu0 %vm349_vm0, %v324_v10  ;;  %780 = vmatpush3.bf16.msra.mxu1 %v814_v15  ;;  %v614_v15 = vstv %s739_s10  ;;  %s743_s20 = scalar_select %p983_p7, 0, 1 }
  0x53   : > { %781 = vmatprep.subr.bf16.mxu1 %v815_v16  ;;  %vm615_vm1 = vcmp.eq.s32.totalorder %v614_v15, 1  ;;  %s741_s0 = scalar_select %p1127_p13, 0, 1 }
  0x54   : > { %s744_s24 = scalar_select %p989_p4, 0, 1 }
  0x55   : > { %s742_s8 = scalar_select %p1128_p5, 0, 1 }
  0x56   : > { %782 = vmatpush3.bf16.msra.mxu1 %v815_v16  ;;  %v728_v16 = vld [vmem:[%s1099_s5] ss:$0 sm:$0xff] }
  0x57   : > { %783 = vmatprep.subr.bf16.mxu1 %v816_v17 }
  0x59   : > { %774 = vmatmul.mubr.msk.bf16.gmra.mxu0 %vm349_vm0, %v325_v13 }
  0x5a   : > { %784 = vmatpush3.bf16.msra.mxu1 %v816_v17  ;;  %v604_v17 = vstv %s737_s12 }
  0x5b   : > { %785 = vmatprep.subr.bf16.mxu1 %v817_v18  ;;  %vm605_vm2 = vcmp.eq.s32.totalorder %v604_v17, 1 }
  0x5e   : > { %786 = vmatpush3.bf16.msra.mxu1 %v817_v18 }
  0x5f   : > { %787 = vmatprep.subr.bf16.mxu1 %v818_v19 }
  0x62   : > { %788 = vmatpush3.bf16.msra.mxu1 %v818_v19 }
  0x63   : > { %789 = vmatprep.subr.bf16.mxu1 %v819_v20 }
  0x66   : > { %790 = vmatpush3.bf16.msra.mxu1 %v819_v20  ;;  %v619_v20 = vstv %s740_s11 }
  0x67   : > { %791 = vmatprep.subr.bf16.mxu1 %v820_v21  ;;  %vm620_vm3 = vcmp.eq.s32.totalorder %v619_v20, 1 }
  0x6a   : > { %792 = vmatpush3.bf16.msra.mxu1 %v820_v21 }
 0x111   : > { %v771_v22 = vpop.f32.mrf.mxu0 }
 0x112   : > { %v405_v26 = vadd.f32 %v771_v22, %v721_v23 }
 0x113   : > { %v396_v24 = vpop.f32.mrf.mxu0 }
 0x114   : > { %v397_v29 = vadd.f32 %v721_v23, %v396_v24  ;;  %v609_v24 = vstv %s738_s27 }
 0x115   : > { %v772_v25 = vpop.f32.mrf.mxu0  ;;  %vm610_vm4 = vcmp.eq.s32.totalorder %v609_v24, 1 }
 0x116   : > { %v408_v27 = vadd.f32 %v772_v25, %v721_v23 }
 0x117   : > { %v399_v28 = vpop.f32.mrf.mxu0 }
 0x118   : > { %v428_v30 = vpack.c.bf16 %v408_v27, %v405_v26  ;;  %v400_v31 = vadd.f32 %v721_v23, %v399_v28  ;;  %v634_v28 = vstv %s743_s20 }
 0x119   : > { %v775_v32 = vpop.f32.mrf.mxu0  ;;  %vm635_vm5 = vcmp.eq.s32.totalorder %v634_v28, 1 }
 0x11a   : > { %v436_v33 = vmul.bf16 %v428_v30, %v428_v30  ;;  %v427_v34 = vpack.c.bf16 %v400_v31, %v397_v29  ;;  %v421_v40 = vadd.f32 %v775_v32, %v721_v23  ;;  %v432_v4 = vmul.bf16 1056980736, %v428_v30 }
 0x11b   : > { %v412_v35 = vpop.f32.mrf.mxu0  ;;  %v624_v32 = vstv %s741_s0 }
 0x11c   : > { %v440_v36 = vmul.bf16 %v436_v33, %v428_v30  ;;  %v435_v37 = vmul.bf16 %v427_v34, %v427_v34  ;;  %v413_v43 = vadd.f32 %v721_v23, %v412_v35  ;;  %v431_v2 = vmul.bf16 1056980736, %v427_v34 }
 0x11d   : > { %v776_v38 = vpop.f32.mrf.mxu0  ;;  %vm625_vm6 = vcmp.eq.s32.totalorder %v624_v32, 1 }
 0x11e   : > { %v444_v39 = vmul.bf16 1027030327, %v440_v36  ;;  %v424_v41 = vadd.f32 %v776_v38, %v721_v23  ;;  %v439_v42 = vmul.bf16 %v435_v37, %v427_v34  ;;  %v639_v36 = vstv %s744_s24 }
 0x11f   : > { %v415_v44 = vpop.f32.mrf.mxu0  ;;  %vm640_vm7 = vcmp.eq.s32.totalorder %v639_v36, 1 }
 0x120   : > { %v448_v45 = vadd.bf16 %v444_v39, %v428_v30  ;;  %v430_v46 = vpack.c.bf16 %v424_v41, %v421_v40  ;;  %v416_v47 = vadd.f32 %v721_v23, %v415_v44  ;;  %v443_v48 = vmul.bf16 1027030327, %v439_v42 }
 0x121   : > { %v629_v40 = vstv %s742_s8 }
 0x122   : > { %v438_v49 = vmul.bf16 %v430_v46, %v430_v46  ;;  %v429_v50 = vpack.c.bf16 %v416_v47, %v413_v43  ;;  %v447_v51 = vadd.bf16 %v443_v48, %v427_v34  ;;  %v452_v52 = vmul.bf16 1061961548, %v448_v45 }
 0x123   : > { %v434_v12 = vmul.bf16 1056980736, %v430_v46  ;;  %vm630_vm8 = vcmp.eq.s32.totalorder %v629_v40, 1 }
 0x124   : > { %v442_v53 = vmul.bf16 %v438_v49, %v430_v46  ;;  %v437_v54 = vmul.bf16 %v429_v50, %v429_v50  ;;  %v451_v55 = vmul.bf16 1061961548, %v447_v51  ;;  %821 = vtanh.bf16 %v452_v52 }
 0x125   : > { %v433_v10 = vmul.bf16 1056980736, %v429_v50 }
 0x126   : > { %v446_v56 = vmul.bf16 1027030327, %v442_v53  ;;  %v441_v57 = vmul.bf16 %v437_v54, %v429_v50  ;;  %823 = vtanh.bf16 %v451_v55 }
 0x128   : > { %v450_v58 = vadd.bf16 %v446_v56, %v430_v46  ;;  %v445_v59 = vmul.bf16 1027030327, %v441_v57 }
 0x12a   : > { %v449_v60 = vadd.bf16 %v445_v59, %v429_v50  ;;  %v454_v61 = vmul.bf16 1061961548, %v450_v58 }
 0x12c   : > { %v453_v62 = vmul.bf16 1061961548, %v449_v60  ;;  %825 = vtanh.bf16 %v454_v61 }
 0x12e   : > { %827 = vtanh.bf16 %v453_v62 }
 0x132   : > { %v822_v63 = vpop.eup %821 }
 0x133   : > { %v460_v1 = vadd.bf16 1065369472, %v822_v63 }
 0x134   : > { %v824_v0 = vpop.eup %823 }
 0x135   : > { %v459_v3 = vadd.bf16 1065369472, %v824_v0  ;;  %v464_v6 = vmul.bf16 %v460_v1, %v432_v4 }
 0x137   : > { %v463_v5 = vmul.bf16 %v459_v3, %v431_v2 }
 0x139   : > { %793 = vmatprep.mubr.bf16.mxu1 %v463_v5 }
 0x13a   : > { %v826_v7 = vpop.eup %825  ;;  %794 = vmatmul.mubr.bf16.vlgmr.msra.gmra.mxu1 %v464_v6 }
 0x13b   : > { %v462_v9 = vadd.bf16 1065369472, %v826_v7 }
 0x13c   : > { %v828_v8 = vpop.eup %827 }
 0x13d   : > { %v461_v11 = vadd.bf16 1065369472, %v828_v8  ;;  %v466_v14 = vmul.bf16 %v462_v9, %v434_v12 }
 0x13f   : > { %v465_v13 = vmul.bf16 %v461_v11, %v433_v10 }
 0x141   : > { %797 = vmatprep.mubr.bf16.mxu1 %v465_v13 }
 0x142   : > { %798 = vmatmul.mubr.bf16.gmra.mxu1 %v466_v14 }
 0x1fa   : > { %v795_v18 = vpop.f32.mrf.mxu1 }
 0x1fb   : > { %v581_v19 = vadd.f32 %v795_v18, %v728_v16 }
 0x1fc   : > { %v572_v21 = vpop.f32.mrf.mxu1 }
 0x1fd   : > { %v616_v22 = vsel %vm615_vm1, %v581_v19, 0.0  ;;  %v573_v23 = vadd.f32 %v728_v16, %v572_v21 }
 0x1fe   : > { %617 = vst.msk [vmem:[%s914_s14 + $0x10] sm:$0xff] %vm349_vm0, %v616_v22  ;;  %v796_v25 = vpop.f32.mrf.mxu1 }
 0x1ff   : > { %v606_v26 = vsel %vm605_vm2, %v573_v23, 0.0  ;;  %v584_v27 = vadd.f32 %v796_v25, %v728_v16 }
 0x200   : > { %607 = vst.msk [vmem:[%s914_s14] sm:$0xff] %vm349_vm0, %v606_v26  ;;  %v575_v29 = vpop.f32.mrf.mxu1 }
 0x201   : > { %v621_v30 = vsel %vm620_vm3, %v584_v27, 0.0  ;;  %v576_v31 = vadd.f32 %v728_v16, %v575_v29 }
 0x202   : > { %622 = vst.msk [vmem:[%s914_s14 + $0x18] sm:$0xff] %vm349_vm0, %v621_v30  ;;  %v799_v33 = vpop.f32.mrf.mxu1 }
 0x203   : > { %v611_v34 = vsel %vm610_vm4, %v576_v31, 0.0  ;;  %v597_v35 = vadd.f32 %v799_v33, %v728_v16 }
 0x204   : > { %612 = vst.msk [vmem:[%s914_s14 + $0x8] sm:$0xff] %vm349_vm0, %v611_v34  ;;  %v588_v37 = vpop.f32.mrf.mxu1 }
 0x205   : > { %v636_v38 = vsel %vm635_vm5, %v597_v35, 0.0  ;;  %v589_v39 = vadd.f32 %v728_v16, %v588_v37 }
 0x206   : > { %637 = vst.msk [vmem:[%s914_s14 + $0x30] sm:$0xff] %vm349_vm0, %v636_v38  ;;  %v800_v41 = vpop.f32.mrf.mxu1 }
 0x207   : > { %v626_v42 = vsel %vm625_vm6, %v589_v39, 0.0  ;;  %v600_v43 = vadd.f32 %v800_v41, %v728_v16 }
 0x208   : > { %627 = vst.msk [vmem:[%s914_s14 + $0x20] sm:$0xff] %vm349_vm0, %v626_v42  ;;  %v591_v44 = vpop.f32.mrf.mxu1 }
 0x209   : > { %v641_v45 = vsel %vm640_vm7, %v600_v43, 0.0  ;;  %v592_v46 = vadd.f32 %v728_v16, %v591_v44 }
 0x20a   : > { %642 = vst.msk [vmem:[%s914_s14 + $0x38] sm:$0xff] %vm349_vm0, %v641_v45 }
 0x20b   : > { %v631_v47 = vsel %vm630_vm8, %v592_v46, 0.0 }
 0x20c   : > { %632 = vst.msk [vmem:[%s914_s14 + $0x28] sm:$0xff] %vm349_vm0, %v631_v47 }
 0x20d PF: > { %645 = sbr.rel (%p995_p2) target bundleno = 535 (0x217), region = 48 }
 0x212   : > { %vm646_vm9 = vcmask 261120   ;;  %v852_v48 = vmov 0.0  }
 0x213   : > { %647 = vst.msk [vmem:[%s914_s14] sm:$0xff] %vm646_vm9, %v852_v48  ;;  %648 = vst.msk [vmem:[%s914_s14 + $0x8] sm:$0xff] %vm646_vm9, %v852_v48 }
 0x214   : > { %649 = vst.msk [vmem:[%s914_s14 + $0x10] sm:$0xff] %vm646_vm9, %v852_v48  ;;  %650 = vst.msk [vmem:[%s914_s14 + $0x18] sm:$0xff] %vm646_vm9, %v852_v48 }
 0x215   : > { %651 = vst.msk [vmem:[%s914_s14 + $0x20] sm:$0xff] %vm646_vm9, %v852_v48  ;;  %652 = vst.msk [vmem:[%s914_s14 + $0x28] sm:$0xff] %vm646_vm9, %v852_v48 }
 0x216   : > { %653 = vst.msk [vmem:[%s914_s14 + $0x30] sm:$0xff] %vm646_vm9, %v852_v48  ;;  %654 = vst.msk [vmem:[%s914_s14 + $0x38] sm:$0xff] %vm646_vm9, %v852_v48 }
 0x217 PF: > { %s22_s26 = sadd.s32 1, %s849_s26  }
 0x218   : > { %p19_p7 = scmp.ge.s32.totalorder %s22_s26, 4  }
 0x21a   :  { %21 = sbr.rel (!%p19_p7) target bundleno = 16 (0x10), region = 78 }

// kernel: tpu_custom_call.1
= control target key start
LH: loop header
LB: loop body
LE: loop exit
PB: predicated region body
PF: predicated region fallthrough
CT: control target
= control target key end

     0   :  { %s1094_s0 = inlined_call_operand.vmem [shape: s32[16], index: 0, kind: input, shape index: {}]   ;;  %s1095_s1 = inlined_call_operand.vmem [shape: f32[128,32], index: 1, kind: input, shape index: {}]   ;;  %s1096_s2 = inlined_call_operand.vmem [shape: bf16[32,128], index: 2, kind: input, shape index: {}]   ;;  %s1097_s3 = inlined_call_operand.vmem [shape: f32[1,128], index: 3, kind: input, shape index: {}]   ;;  %s1098_s4 = inlined_call_operand.vmem [shape: bf16[128,32], index: 4, kind: input, shape index: {}]   ;;  %s1099_s5 = inlined_call_operand.vmem [shape: f32[1,32], index: 5, kind: input, shape index: {}]   ;;  %s1100_s6 = inlined_call_operand.vmem [shape: f32[128,32], index: 6, kind: output, shape index: {}]  }
   0x1   :  { %s11_s23 = sshll.u32 %s1094_s0, 4  ;;  %s12_s23 = int_to_ptr.vmem [resolvable:$true] %s11_s23 }
   0x2   :  { %s829_s24 = scalar_lea.vmem %s12_s23, 16  ;;  %p834_p1 = scmp.lt.s32.totalorder %s12_s23, %s12_s23 }
   0x3   :  { %p830_p0 = scmp.ne.s32.totalorder %s12_s23, %s829_s24  ;;  %p835_p2 = scmp.lt.s32.totalorder %s829_s24, %s829_s24 }
   0x5   :  { %p836_p3 = por %p835_p2, %p834_p1 }
   0x7   :  { %p837_p4 = pnand %p836_p3, %p830_p0 }
   0x9   :  { %840 = shalt.err (!%p837_p4)  }
   0xa   :  { %s851_s25 = smov [#allocation3]  }
   0xb   :  { %14 = dma.vmem_to_smem %s12_s23, 16, %s851_s25, [#allocation2] }
   0xc   :  { %845 = dma.done.wait [#allocation2], 16 }
   0xd   :  { %846 = vsyncadd [#allocation2], 4294967280 }
   0xe   :  { %16 = sfence }
   0xf   :  { %s891_s26 = smov 0  }
  0x10 LB: > { %s711_s0 = sadd.s32 4294967295, %s849_s26   ;;  %p715_p5 = scmp.ge.s32.totalorder %s849_s26, 1  ;;  %s849_s26 = sphi %s891_s26, %s22_s26  }
  0x11   : > { %p195_p6 = scmp.lt.s32.totalorder %s849_s26, 3 }
  0x13   : > { %p196_p7 = pnand %p715_p5, %p195_p6 }
  0x14   : > { %s899_s27 = sshll.u32 (!%p196_p7), %s711_s0, 3 }
  0x15   : > { %199 = sbr.rel (%p196_p7) target bundleno = 535 (0x217), region = 40  ;;  %p224_p8 = scmp.lt.s32.totalorder (!%p196_p7), %s899_s27, 15 }
  0x16   : > { %p241_p9 = scmp.lt.s32.totalorder (!%p196_p7), %s899_s27, 16  ;;  %s248_s28 = sadd.s32 (!%p196_p7), 1, %s899_s27 }
  0x17   : > { %p250_p10 = scmp.lt.s32.totalorder (!%p196_p7), %s248_s28, 15  ;;  %s256_s30 = sadd.s32 (!%p196_p7), 2, %s899_s27 }
  0x18   : > { %p249_p11 = scmp.lt.s32.totalorder (!%p196_p7), %s248_s28, 16  ;;  %p258_p12 = scmp.lt.s32.totalorder (!%p196_p7), %s256_s30, 15 }
  0x19   : > { %s264_s17 = sadd.s32 (!%p196_p7), 3, %s899_s27  ;;  %p257_p0 = scmp.lt.s32.totalorder (!%p196_p7), %s256_s30, 16 }
  0x1a   : > { %s225_s29 = scalar_select %p224_p8, %s899_s27, 15 }
  0x1b   : > { %s251_s15 = scalar_select %p250_p10, %s248_s28, 15 }
  0x1c   : > { %s717_s7 = sshll.u32 %s225_s29, 3  ;;  %s244_s8 = sld [smem:[#allocation3 + %s225_s29]] }
  0x1d   : > { %s909_s11 = scalar_lea.vmem %s1095_s1, %s717_s7  ;;  %s914_s14 = scalar_lea.vmem %s1100_s6, %s717_s7 }
  0x1e   : > { %s252_s16 = sld [smem:[#allocation3 + %s251_s15]]  ;;  %p266_p1 = scmp.lt.s32.totalorder %s264_s17, 15 }
  0x1f   : > { %s259_s18 = scalar_select %p258_p12, %s256_s30, 15 }
  0x20   : > { %s924_s21 = sadd.s32 4, %s899_s27  ;;  %p265_p4 = scmp.lt.s32.totalorder %s264_s17, 16 }
  0x21   : > { %s260_s19 = sld [smem:[#allocation3 + %s259_s18]]  ;;  %p274_p7 = scmp.lt.s32.totalorder %s924_s21, 15 }
  0x22   : > { %p245_p13 = scmp.ne.s32.totalorder %s244_s8, 0  ;;  %s280_s25 = sadd.s32 5, %s899_s27 }
  0x23   : > { %s267_s22 = scalar_select %p266_p1, %s264_s17, 15 }
  0x24   : > { %p919_p2 = pnand %p245_p13, %p241_p9  ;;  %p253_p3 = scmp.ne.s32.totalorder %s252_s16, 0 }
  0x25   : > { %s268_s23 = sld [smem:[#allocation3 + %s267_s22]]  ;;  %p273_p10 = scmp.lt.s32.totalorder %s924_s21, 16 }
  0x26   : > { %s1107_s20 = scalar_select %p919_p2, 1, 0 }
  0x27   : > { %p929_p6 = pnand %p253_p3, %p249_p11  ;;  %p261_p8 = scmp.ne.s32.totalorder %s260_s19, 0 }
  0x28   : > { %p282_p13 = scmp.lt.s32.totalorder %s280_s25, 15  ;;  %s288_s7 = sadd.s32 6, %s899_s27 }
  0x29   : > { %s1108_s24 = scalar_select %p929_p6, 1, 0 }
  0x2a   : > { %p939_p12 = pnand %p261_p8, %p257_p0  ;;  %p290_p8 = scmp.lt.s32.totalorder %s288_s7, 15 }
  0x2b   : > { %s275_s28 = scalar_select %p274_p7, %s924_s21, 15 }
  0x2c   : > { %s1109_s0 = scalar_select %p939_p12, 1, 0 }
  0x2d   : > { %p269_p11 = scmp.ne.s32.totalorder %s268_s23, 0  ;;  %s276_s29 = sld [smem:[#allocation3 + %s275_s28]] }
  0x2e   : > { %s283_s30 = scalar_select %p282_p13, %s280_s25, 15 }
  0x2f   : > { %p948_p9 = pnand %p269_p11, %p265_p4  ;;  %s296_s10 = sadd.s32 7, %s899_s27 }
  0x30   : > { %s284_s9 = sld [smem:[#allocation3 + %s283_s30]]  ;;  %p298_p5 = scmp.lt.s32.totalorder %s296_s10, 15 }
  0x31   : > { %s1110_s8 = scalar_select %p948_p9, 1, 0 }
  0x32   : > { %s291_s12 = scalar_select %p290_p8, %s288_s7, 15 }
  0x33   : > { %p277_p1 = scmp.ne.s32.totalorder %s276_s29, 0  ;;  %p1112_p4 = pneg %p919_p2 }
  0x34   : > { %s292_s13 = sld [smem:[#allocation3 + %s291_s12]]  ;;  %p1113_p13 = pneg %p929_p6 }
  0x35   : > { %p957_p3 = pnand %p277_p1, %p273_p10  ;;  %p1114_p7 = pneg %p939_p12 }
  0x36   : > { %p304_p11 = por %p1113_p13, %p1112_p4  ;;  %p285_p8 = scmp.ne.s32.totalorder %s284_s9, 0 }
  0x37   : > { %s1111_s15 = scalar_select %p957_p3, 1, 0 }
  0x38   : > { %s299_s16 = scalar_select %p298_p5, %s296_s10, 15 }
  0x39   : > { %p279_p0 = pneg %p957_p3  ;;  %p305_p9 = por %p304_p11, %p1114_p7 }
  0x3a   : > { %s300_s27 = sld [smem:[#allocation3 + %s299_s16]]  ;;  %p1115_p1 = scmp.lt.s32.totalorder %s280_s25, 16 }
  0x3b   : > { %p293_p2 = scmp.ne.s32.totalorder %s292_s13, 0  ;;  %p1117_p6 = scmp.ne.s32.totalorder %s1110_s8, 0 }
  0x3c   : > { %p973_p10 = pnand %p285_p8, %p1115_p1  ;;  %p297_p3 = scmp.lt.s32.totalorder %s296_s10, 16 }
  0x3d   : > { %p1118_p4 = pneg %p1117_p6  ;;  %p1119_p12 = scmp.lt.s32.totalorder %s288_s7, 16 }
  0x3e   : > { %s1116_s17 = scalar_select %p973_p10, 1, 0 }
  0x3f   : > { %p306_p13 = por %p305_p9, %p1118_p4  ;;  %p287_p5 = pneg %p973_p10 }
  0x40   : > { %p983_p7 = pnand %p293_p2, %p1119_p12  ;;  %p301_p1 = scmp.ne.s32.totalorder %s300_s27, 0 }
  0x41   : > { %p307_p11 = por %p306_p13, %p279_p0 }
  0x42   : > { %p295_p8 = pneg %p983_p7  ;;  %p989_p4 = pnand %p301_p1, %p297_p3 }
  0x43   : > { %p308_p6 = por %p307_p11, %p287_p5 }
  0x44   : > { %p303_p10 = pneg %p989_p4 }
  0x45   : > { %p309_p9 = por %p308_p6, %p295_p8 }
  0x47   : > { %p995_p2 = por %p309_p9, %p303_p10 }
  0x48   : > { %v811_v0 = vld [vmem:[%s1096_s2 + $0x8] sm:$0xff] (%p995_p2)   ;;  %v812_v1 = vld [vmem:[%s1096_s2] sm:$0xff] (%p995_p2)   ;;  %vm349_vm0 = vcmask (%p995_p2), 261120   ;;  %v316_v5 = vld [vmem:[%s909_s11 + $0x10] sm:$0xff] (%p995_p2)  ;;  %p1123_p12 = scmp.ne.s32.totalorder (%p995_p2), %s1109_s0, 0  ;;  %p1124_p3 = scmp.ne.s32.totalorder (%p995_p2), %s1107_s20, 0 }
  0x49   : > { %313 = sbr.rel (!%p995_p2) target bundleno = 525 (0x20d), region = 44  ;;  %765 = vmatprep.subr.bf16.mxu0 (%p995_p2), %v811_v0  ;;  %v314_v2 = vld [vmem:[%s909_s11] sm:$0xff] (%p995_p2)  ;;  %v315_v3 = vld [vmem:[%s909_s11 + $0x8] sm:$0xff] (%p995_p2)  ;;  %v317_v6 = vld [vmem:[%s909_s11 + $0x18] sm:$0xff] (%p995_p2)  ;;  %p1125_p0 = scmp.ne.s32.totalorder (%p995_p2), %s1110_s8, 0 }
  0x4a   : > { %766 = vmatpush3.bf16.msra.mxu0 (%p995_p2), %v811_v0  ;;  %v322_v4 = vpack.c.bf16 (%p995_p2), %v315_v3, %v314_v2  ;;  %v318_v7 = vld [vmem:[%s909_s11 + $0x20] sm:$0xff] (%p995_p2)  ;;  %v319_v8 = vld [vmem:[%s909_s11 + $0x28] sm:$0xff] (%p995_p2)  ;;  %v323_v9 = vpack.c.bf16 (%p995_p2), %v317_v6, %v316_v5  ;;  %v320_v11 = vld [vmem:[%s909_s11 + $0x30] sm:$0xff] (%p995_p2)  ;;  %p1126_p10 = scmp.ne.s32.totalorder (%p995_p2), %s1108_s24, 0  ;;  %p1127_p13 = scmp.ne.s32.totalorder (%p995_p2), %s1111_s15, 0 }
  0x4b   : > { %767 = vmatprep.subr.bf16.mxu0 (%p995_p2), %v812_v1  ;;  %v324_v10 = vpack.c.bf16 (%p995_p2), %v319_v8, %v318_v7  ;;  %v321_v12 = vld [vmem:[%s909_s11 + $0x38] sm:$0xff] (%p995_p2)  ;;  %v814_v15 = vld [vmem:[%s1098_s4 + $0x30] sm:$0xff] (%p995_p2)   ;;  %v815_v16 = vld [vmem:[%s1098_s4 + $0x28] sm:$0xff] (%p995_p2)   ;;  %p1128_p5 = scmp.ne.s32.totalorder (%p995_p2), %s1116_s17, 0 }
  0x4c   : > { %769 = vmatprep.mubr.msk.bf16.mxu0 (%p995_p2), %vm349_vm0, %v322_v4  ;;  %v325_v13 = vpack.c.bf16 (%p995_p2), %v321_v12, %v320_v11  ;;  %v813_v14 = vld [vmem:[%s1098_s4 + $0x38] sm:$0xff] (%p995_p2)   ;;  %v816_v17 = vld [vmem:[%s1098_s4 + $0x20] sm:$0xff] (%p995_p2)   ;;  %v818_v19 = vld [vmem:[%s1098_s4 + $0x10] sm:$0xff] (%p995_p2)  }
  0x4d   : > { %777 = vmatprep.subr.bf16.mxu1 (%p995_p2), %v813_v14  ;;  %v817_v18 = vld [vmem:[%s1098_s4 + $0x18] sm:$0xff] (%p995_p2)   ;;  %v819_v20 = vld [vmem:[%s1098_s4 + $0x8] sm:$0xff] (%p995_p2)   ;;  %v820_v21 = vld [vmem:[%s1098_s4] sm:$0xff] (%p995_p2)  }
  0x4e   : > { %768 = vmatpush3.bf16.msra.mxu0 %v812_v1  ;;  %778 = vmatpush3.bf16.msra.mxu1 %v813_v14  ;;  %v721_v23 = vld [vmem:[%s1097_s3] ss:$0 sm:$0xff]  ;;  %s739_s10 = scalar_select %p1123_p12, 0, 1 }
  0x4f   : > { %779 = vmatprep.subr.bf16.mxu1 %v814_v15  ;;  %s737_s12 = scalar_select %p1124_p3, 0, 1 }
  0x50   : > { %s740_s11 = scalar_select %p1125_p0, 0, 1 }
  0x51   : > { %770 = vmatmul.mubr.msk.bf16.vlgmr.msra.gmra.mxu0 %vm349_vm0, %v323_v9  ;;  %s738_s27 = scalar_select %p1126_p10, 0, 1 }
  0x52   : > { %773 = vmatprep.mubr.msk.bf16.mxu0 %vm349_vm0, %v324_v10  ;;  %780 = vmatpush3.bf16.msra.mxu1 %v814_v15  ;;  %v614_v15 = vstv %s739_s10  ;;  %s743_s20 = scalar_select %p983_p7, 0, 1 }
  0x53   : > { %781 = vmatprep.subr.bf16.mxu1 %v815_v16  ;;  %vm615_vm1 = vcmp.eq.s32.totalorder %v614_v15, 1  ;;  %s741_s0 = scalar_select %p1127_p13, 0, 1 }
  0x54   : > { %s744_s24 = scalar_select %p989_p4, 0, 1 }
  0x55   : > { %s742_s8 = scalar_select %p1128_p5, 0, 1 }
  0x56   : > { %782 = vmatpush3.bf16.msra.mxu1 %v815_v16  ;;  %v728_v16 = vld [vmem:[%s1099_s5] ss:$0 sm:$0xff] }
  0x57   : > { %783 = vmatprep.subr.bf16.mxu1 %v816_v17 }
  0x59   : > { %774 = vmatmul.mubr.msk.bf16.gmra.mxu0 %vm349_vm0, %v325_v13 }
  0x5a   : > { %784 = vmatpush3.bf16.msra.mxu1 %v816_v17  ;;  %v604_v17 = vstv %s737_s12 }
  0x5b   : > { %785 = vmatprep.subr.bf16.mxu1 %v817_v18  ;;  %vm605_vm2 = vcmp.eq.s32.totalorder %v604_v17, 1 }
  0x5e   : > { %786 = vmatpush3.bf16.msra.mxu1 %v817_v18 }
  0x5f   : > { %787 = vmatprep.subr.bf16.mxu1 %v818_v19 }
  0x62   : > { %788 = vmatpush3.bf16.msra.mxu1 %v818_v19 }
  0x63   : > { %789 = vmatprep.subr.bf16.mxu1 %v819_v20 }
  0x66   : > { %790 = vmatpush3.bf16.msra.mxu1 %v819_v20  ;;  %v619_v20 = vstv %s740_s11 }
  0x67   : > { %791 = vmatprep.subr.bf16.mxu1 %v820_v21  ;;  %vm620_vm3 = vcmp.eq.s32.totalorder %v619_v20, 1 }
  0x6a   : > { %792 = vmatpush3.bf16.msra.mxu1 %v820_v21 }
 0x111   : > { %v771_v22 = vpop.f32.mrf.mxu0 }
 0x112   : > { %v405_v26 = vadd.f32 %v771_v22, %v721_v23 }
 0x113   : > { %v396_v24 = vpop.f32.mrf.mxu0 }
 0x114   : > { %v397_v29 = vadd.f32 %v721_v23, %v396_v24  ;;  %v609_v24 = vstv %s738_s27 }
 0x115   : > { %v772_v25 = vpop.f32.mrf.mxu0  ;;  %vm610_vm4 = vcmp.eq.s32.totalorder %v609_v24, 1 }
 0x116   : > { %v408_v27 = vadd.f32 %v772_v25, %v721_v23 }
 0x117   : > { %v399_v28 = vpop.f32.mrf.mxu0 }
 0x118   : > { %v428_v30 = vpack.c.bf16 %v408_v27, %v405_v26  ;;  %v400_v31 = vadd.f32 %v721_v23, %v399_v28  ;;  %v634_v28 = vstv %s743_s20 }
 0x119   : > { %v775_v32 = vpop.f32.mrf.mxu0  ;;  %vm635_vm5 = vcmp.eq.s32.totalorder %v634_v28, 1 }
 0x11a   : > { %v436_v33 = vmul.bf16 %v428_v30, %v428_v30  ;;  %v427_v34 = vpack.c.bf16 %v400_v31, %v397_v29  ;;  %v421_v40 = vadd.f32 %v775_v32, %v721_v23  ;;  %v432_v4 = vmul.bf16 1056980736, %v428_v30 }
 0x11b   : > { %v412_v35 = vpop.f32.mrf.mxu0  ;;  %v624_v32 = vstv %s741_s0 }
 0x11c   : > { %v440_v36 = vmul.bf16 %v436_v33, %v428_v30  ;;  %v435_v37 = vmul.bf16 %v427_v34, %v427_v34  ;;  %v413_v43 = vadd.f32 %v721_v23, %v412_v35  ;;  %v431_v2 = vmul.bf16 1056980736, %v427_v34 }
 0x11d   : > { %v776_v38 = vpop.f32.mrf.mxu0  ;;  %vm625_vm6 = vcmp.eq.s32.totalorder %v624_v32, 1 }
 0x11e   : > { %v444_v39 = vmul.bf16 1027030327, %v440_v36  ;;  %v424_v41 = vadd.f32 %v776_v38, %v721_v23  ;;  %v439_v42 = vmul.bf16 %v435_v37, %v427_v34  ;;  %v639_v36 = vstv %s744_s24 }
 0x11f   : > { %v415_v44 = vpop.f32.mrf.mxu0  ;;  %vm640_vm7 = vcmp.eq.s32.totalorder %v639_v36, 1 }
 0x120   : > { %v448_v45 = vadd.bf16 %v444_v39, %v428_v30  ;;  %v430_v46 = vpack.c.bf16 %v424_v41, %v421_v40  ;;  %v416_v47 = vadd.f32 %v721_v23, %v415_v44  ;;  %v443_v48 = vmul.bf16 1027030327, %v439_v42 }
 0x121   : > { %v629_v40 = vstv %s742_s8 }
 0x122   : > { %v438_v49 = vmul.bf16 %v430_v46, %v430_v46  ;;  %v429_v50 = vpack.c.bf16 %v416_v47, %v413_v43  ;;  %v447_v51 = vadd.bf16 %v443_v48, %v427_v34  ;;  %v452_v52 = vmul.bf16 1061961548, %v448_v45 }
 0x123   : > { %v434_v12 = vmul.bf16 1056980736, %v430_v46  ;;  %vm630_vm8 = vcmp.eq.s32.totalorder %v629_v40, 1 }
 0x124   : > { %v442_v53 = vmul.bf16 %v438_v49, %v430_v46  ;;  %v437_v54 = vmul.bf16 %v429_v50, %v429_v50  ;;  %v451_v55 = vmul.bf16 1061961548, %v447_v51  ;;  %821 = vtanh.bf16 %v452_v52 }
 0x125   : > { %v433_v10 = vmul.bf16 1056980736, %v429_v50 }
 0x126   : > { %v446_v56 = vmul.bf16 1027030327, %v442_v53  ;;  %v441_v57 = vmul.bf16 %v437_v54, %v429_v50  ;;  %823 = vtanh.bf16 %v451_v55 }
 0x128   : > { %v450_v58 = vadd.bf16 %v446_v56, %v430_v46  ;;  %v445_v59 = vmul.bf16 1027030327, %v441_v57 }
 0x12a   : > { %v449_v60 = vadd.bf16 %v445_v59, %v429_v50  ;;  %v454_v61 = vmul.bf16 1061961548, %v450_v58 }
 0x12c   : > { %v453_v62 = vmul.bf16 1061961548, %v449_v60  ;;  %825 = vtanh.bf16 %v454_v61 }
 0x12e   : > { %827 = vtanh.bf16 %v453_v62 }
 0x132   : > { %v822_v63 = vpop.eup %821 }
 0x133   : > { %v460_v1 = vadd.bf16 1065369472, %v822_v63 }
 0x134   : > { %v824_v0 = vpop.eup %823 }
 0x135   : > { %v459_v3 = vadd.bf16 1065369472, %v824_v0  ;;  %v464_v6 = vmul.bf16 %v460_v1, %v432_v4 }
 0x137   : > { %v463_v5 = vmul.bf16 %v459_v3, %v431_v2 }
 0x139   : > { %793 = vmatprep.mubr.bf16.mxu1 %v463_v5 }
 0x13a   : > { %v826_v7 = vpop.eup %825  ;;  %794 = vmatmul.mubr.bf16.vlgmr.msra.gmra.mxu1 %v464_v6 }
 0x13b   : > { %v462_v9 = vadd.bf16 1065369472, %v826_v7 }
 0x13c   : > { %v828_v8 = vpop.eup %827 }
 0x13d   : > { %v461_v11 = vadd.bf16 1065369472, %v828_v8  ;;  %v466_v14 = vmul.bf16 %v462_v9, %v434_v12 }
 0x13f   : > { %v465_v13 = vmul.bf16 %v461_v11, %v433_v10 }
 0x141   : > { %797 = vmatprep.mubr.bf16.mxu1 %v465_v13 }
 0x142   : > { %798 = vmatmul.mubr.bf16.gmra.mxu1 %v466_v14 }
 0x1fa   : > { %v795_v18 = vpop.f32.mrf.mxu1 }
 0x1fb   : > { %v581_v19 = vadd.f32 %v795_v18, %v728_v16 }
 0x1fc   : > { %v572_v21 = vpop.f32.mrf.mxu1 }
 0x1fd   : > { %v616_v22 = vsel %vm615_vm1, %v581_v19, 0.0  ;;  %v573_v23 = vadd.f32 %v728_v16, %v572_v21 }
 0x1fe   : > { %617 = vst.msk [vmem:[%s914_s14 + $0x10] sm:$0xff] %vm349_vm0, %v616_v22  ;;  %v796_v25 = vpop.f32.mrf.mxu1 }
 0x1ff   : > { %v606_v26 = vsel %vm605_vm2, %v573_v23, 0.0  ;;  %v584_v27 = vadd.f32 %v796_v25, %v728_v16 }
 0x200   : > { %607 = vst.msk [vmem:[%s914_s14] sm:$0xff] %vm349_vm0, %v606_v26  ;;  %v575_v29 = vpop.f32.mrf.mxu1 }
 0x201   : > { %v621_v30 = vsel %vm620_vm3, %v584_v27, 0.0  ;;  %v576_v31 = vadd.f32 %v728_v16, %v575_v29 }
 0x202   : > { %622 = vst.msk [vmem:[%s914_s14 + $0x18] sm:$0xff] %vm349_vm0, %v621_v30  ;;  %v799_v33 = vpop.f32.mrf.mxu1 }
 0x203   : > { %v611_v34 = vsel %vm610_vm4, %v576_v31, 0.0  ;;  %v597_v35 = vadd.f32 %v799_v33, %v728_v16 }
 0x204   : > { %612 = vst.msk [vmem:[%s914_s14 + $0x8] sm:$0xff] %vm349_vm0, %v611_v34  ;;  %v588_v37 = vpop.f32.mrf.mxu1 }
 0x205   : > { %v636_v38 = vsel %vm635_vm5, %v597_v35, 0.0  ;;  %v589_v39 = vadd.f32 %v728_v16, %v588_v37 }
 0x206   : > { %637 = vst.msk [vmem:[%s914_s14 + $0x30] sm:$0xff] %vm349_vm0, %v636_v38  ;;  %v800_v41 = vpop.f32.mrf.mxu1 }
 0x207   : > { %v626_v42 = vsel %vm625_vm6, %v589_v39, 0.0  ;;  %v600_v43 = vadd.f32 %v800_v41, %v728_v16 }
 0x208   : > { %627 = vst.msk [vmem:[%s914_s14 + $0x20] sm:$0xff] %vm349_vm0, %v626_v42  ;;  %v591_v44 = vpop.f32.mrf.mxu1 }
 0x209   : > { %v641_v45 = vsel %vm640_vm7, %v600_v43, 0.0  ;;  %v592_v46 = vadd.f32 %v728_v16, %v591_v44 }
 0x20a   : > { %642 = vst.msk [vmem:[%s914_s14 + $0x38] sm:$0xff] %vm349_vm0, %v641_v45 }
 0x20b   : > { %v631_v47 = vsel %vm630_vm8, %v592_v46, 0.0 }
 0x20c   : > { %632 = vst.msk [vmem:[%s914_s14 + $0x28] sm:$0xff] %vm349_vm0, %v631_v47 }
 0x20d PF: > { %645 = sbr.rel (%p995_p2) target bundleno = 535 (0x217), region = 48 }
 0x212   : > { %vm646_vm9 = vcmask 261120   ;;  %v852_v48 = vmov 0.0  }
 0x213   : > { %647 = vst.msk [vmem:[%s914_s14] sm:$0xff] %vm646_vm9, %v852_v48  ;;  %648 = vst.msk [vmem:[%s914_s14 + $0x8] sm:$0xff] %vm646_vm9, %v852_v48 }
 0x214   : > { %649 = vst.msk [vmem:[%s914_s14 + $0x10] sm:$0xff] %vm646_vm9, %v852_v48  ;;  %650 = vst.msk [vmem:[%s914_s14 + $0x18] sm:$0xff] %vm646_vm9, %v852_v48 }
 0x215   : > { %651 = vst.msk [vmem:[%s914_s14 + $0x20] sm:$0xff] %vm646_vm9, %v852_v48  ;;  %652 = vst.msk [vmem:[%s914_s14 + $0x28] sm:$0xff] %vm646_vm9, %v852_v48 }
 0x216   : > { %653 = vst.msk [vmem:[%s914_s14 + $0x30] sm:$0xff] %vm646_vm9, %v852_v48  ;;  %654 = vst.msk [vmem:[%s914_s14 + $0x38] sm:$0xff] %vm646_vm9, %v852_v48 }
 0x217 PF: > { %s22_s26 = sadd.s32 1, %s849_s26  }
 0x218   : > { %p19_p7 = scmp.ge.s32.totalorder %s22_s26, 4  }
 0x21a   :  { %21 = sbr.rel (!%p19_p7) target bundleno = 16 (0x10), region = 78 }

</bundles_post_ra>
